<compile_context>
chip_gen: v5e
topology: v5e:2x2
jax: 0.10.0
libtpu: 0.0.40
codegen_flags: <defaults>
</compile_context>

<pallas_src>
import functools

import jax
import jax.numpy as jnp
from jax import lax
from jax.experimental import pallas as pl
from jax.experimental.pallas import tpu as pltpu


def _attack_kernel(x0_ref, onehot_ref, w_ref, b_ref, adv_ref, bl_sc,
                   *, eps, step_m, iterations, negate_loss, unroll):
    """One batch tile of the PGD-Linf attack, fully inside VMEM.

    x0_ref     : (TB, D)  f32 clean flattened images (also the attack center)
    onehot_ref : (TB, NC) f32 one-hot targets
    w_ref      : (NC, D)  bf16 effective weight (normalization folded in),
                          grid-invariant, single-buffered resident VMEM
    b_ref      : (1, NC)  f32 effective bias, resident VMEM
    adv_ref    : (TB, D)  output: best adversarial iterate
    bl_sc      : (TB, 1)  scratch: m * best per-sample loss so far
    """
    x0 = x0_ref[...]
    onehot = onehot_ref[...]
    w = w_ref[...]                     # bf16, single resident copy
    b = b_ref[...]

    # Precomputed Linf-ball & [0, 1] box bounds: per-iteration projection
    # collapses to a single min/max pair.
    lo = jnp.maximum(x0 - eps, 0.0)
    hi = jnp.minimum(x0 + eps, 1.0)

    fwd_dims = (((1,), (1,)), ((), ()))   # (TB,D) x (NC,D) -> (TB,NC)
    bwd_dims = (((1,), (0,)), ((), ()))   # (TB,NC) x (NC,D) -> (TB,D)

    def forward(x):
        # helpers.InputNormalize + linear model, with normalization folded
        # into (w, b) in the wrapper. bf16 inputs, f32 MXU accumulation.
        logits = lax.dot_general(x.astype(jnp.bfloat16), w, fwd_dims,
                                 preferred_element_type=jnp.float32) + b
        mx = jnp.max(logits, axis=-1, keepdims=True)
        ex = jnp.exp(logits - mx)
        se = jnp.sum(ex, axis=-1, keepdims=True)
        lse = mx + jnp.log(se)
        tgt = jnp.sum(logits * onehot, axis=-1, keepdims=True)
        losses = lse - tgt                       # per-sample CE, (TB, 1)
        return losses, ex, se

    def signed(losses):                          # m * loss, m folded at trace time
        return -losses if negate_loss else losses

    def replace_best(x, m_losses):
        replace = bl_sc[...] < m_losses          # replace_best: m*bloss < m*loss
        # Masked store: no read-modify-write of the (TB, D) adv buffer.
        pltpu.store(adv_ref, x, mask=jnp.broadcast_to(replace, adv_ref.shape))
        bl_sc[...] = jnp.where(replace, m_losses, bl_sc[...])

    def pgd_step(_, x):
        losses, ex, se = forward(x)
        replace_best(x, signed(losses))
        # d(CE)/d(logits) = softmax - onehot; the positive scalar m/batch factor
        # is absorbed by the sign step (m is folded into step_m), so dropped.
        dlogits = ex * pl.reciprocal(se, approx=True) - onehot
        grad = lax.dot_general(dlogits.astype(jnp.bfloat16), w, bwd_dims,
                               preferred_element_type=jnp.float32)
        # LinfStep.step fused sign+scale. Intentional deviation from jnp.sign:
        # components with grad == 0 take a +step instead of no step.
        x = x + jnp.where(grad >= 0.0, step_m, -step_m)
        # LinfStep.project : clip to eps-ball around orig_input, then [0, 1]
        return jnp.minimum(jnp.maximum(x, lo), hi)

    # init: best loss "None" sentinel (first comparison always replaces, so the
    # first masked store writes the whole adv tile; no separate adv init).
    bl_sc[...] = jnp.full(bl_sc.shape, -jnp.inf, dtype=jnp.float32)

    if unroll:
        x = x0
        for it in range(iterations):
            x = pgd_step(it, x)
    else:
        x = lax.fori_loop(0, iterations, pgd_step, x0)

    # use_best=True: final loss-only evaluation of the last iterate (no grad).
    losses, _, _ = forward(x)
    replace_best(x, signed(losses))              # return_image: to_image == id


def _vmem_plan(B, D, NC):
    """Pick a batch tile and VMEM limit appropriate for the TPU generation."""
    try:
        kind = jax.devices()[0].device_kind.lower()
    except Exception:
        kind = ""
    if "v7" in kind:
        vmem_limit, mult, n_cores = 40 << 20, 256, 2   # 64 MiB physical / TC
    elif "v6" in kind:
        vmem_limit, mult, n_cores = 64 << 20, 256, 1
    else:                                              # v5e and older
        vmem_limit, mult, n_cores = 64 << 20, 128, 1

    # Resident cost: single-buffered bf16 weight + bias + slack.
    fixed = NC * D * 2 + NC * 4 + (64 << 10)
    # Per-batch-row cost: x0 block (x2 buffers), adv block (x2), x carry,
    # lo, hi, grad + element-wise temporaries -> ~10 f32 rows of length D.
    per_row = 10 * D * 4
    budget = int(vmem_limit * 0.75) - fixed
    if budget < per_row * 8:
        # TODO(synk): D-tiled inner pipeline for heads whose bf16 weight
        #             does not leave room for even an 8-row batch tile.
        raise ValueError(
            "Effective classifier weight (NC x D bf16) does not fit the VMEM "
            "budget; a D-tiled inner pipeline would be required.")

    tb = budget // per_row
    if n_cores > 1 and B >= 2 * mult:
        # v7x: keep at least 2 grid steps so both TensorCores get work.
        half = -(-B // 2)                       # cdiv(B, 2)
        half = -(-half // mult) * mult          # round up to tile multiple
        tb = min(tb, half)

    if tb >= B:
        tb = B                                  # whole batch in one tile
    elif tb >= mult:
        tb = (tb // mult) * mult                # MXU-friendly tile multiple
    else:
        tb = max(8, (tb // 8) * 8)              # at least (8, 128) aligned
    return int(tb), int(vmem_limit)


def attacker_forward(x, target, *, weight, bias, mean_c, std_c,
                     eps, step_size, iterations, targeted=False):
    """JAX wrapper: fold normalization into params, tile the batch, run Pallas."""
    B, C, H, W = x.shape
    D = C * H * W
    NC = weight.shape[0]

    x_flat = x.reshape(B, D).astype(jnp.float32)
    onehot = jax.nn.one_hot(target, NC, dtype=jnp.float32)

    # Fold helpers.InputNormalize into the linear classifier:
    #   W ((x - mean)/std) + b  ==  (W/std) x + (b - sum((W/std) * mean))
    mean_vec = jnp.repeat(mean_c.astype(jnp.float32), H * W).reshape(1, D)
    std_vec = jnp.repeat(std_c.astype(jnp.float32), H * W).reshape(1, D)
    w_eff_f32 = weight.astype(jnp.float32) / std_vec                  # (NC, D)
    b_eff = (bias.astype(jnp.float32)
             - jnp.sum(w_eff_f32 * mean_vec, axis=-1)).reshape(1, NC)
    # Single bf16 weight copy for both the forward and backward matmuls
    # (MXU is bf16-native on every generation; accumulation stays f32).
    w_eff = w_eff_f32.astype(jnp.bfloat16)

    m = -1.0 if targeted else 1.0

    tb, vmem_limit = _vmem_plan(B, D, NC)
    # Unroll only short loops on small tiles (LLO visibility); otherwise a
    # rolled fori_loop bounds vreg live ranges and VMEM temporaries.
    unroll = (int(iterations) <= 8) and (tb * D * 4 <= 64 * 1024)

    kernel = functools.partial(
        _attack_kernel,
        eps=float(eps),
        step_m=float(m) * float(step_size),
        iterations=int(iterations),
        negate_loss=bool(targeted),
        unroll=unroll)

    adv_flat = pl.pallas_call(
        kernel,
        out_shape=jax.ShapeDtypeStruct((B, D), jnp.float32),
        grid=(pl.cdiv(B, tb),),
        in_specs=[
            pl.BlockSpec((tb, D), lambda i: (i, 0)),       # x0 tile
            pl.BlockSpec((tb, NC), lambda i: (i, 0)),      # one-hot tile
            # Grid-invariant params: whole-array, single-buffered VMEM residents.
            pl.BlockSpec(memory_space=pltpu.MemorySpace.VMEM),   # bf16 weight
            pl.BlockSpec(memory_space=pltpu.MemorySpace.VMEM),   # f32 bias
        ],
        out_specs=pl.BlockSpec((tb, D), lambda i: (i, 0)),
        scratch_shapes=[pltpu.VMEM((tb, 1), jnp.float32)],  # m * best loss
        compiler_params=pltpu.CompilerParams(
            dimension_semantics=("parallel",),
            vmem_limit_bytes=vmem_limit),
    )(x_flat, onehot, w_eff, b_eff)

    return adv_flat.reshape(B, C, H, W)


def _per_sample_ce(x_img, target, weight, bias, mean_c, std_c):
    """Pure-JAX reference loss (normalize -> linear -> CE) for sanity checks."""
    B, C, H, W = x_img.shape
    xn = (x_img - mean_c.reshape(1, C, 1, 1)) / std_c.reshape(1, C, 1, 1)
    logits = xn.reshape(B, -1) @ weight.T + bias
    lse = jax.scipy.special.logsumexp(logits, axis=-1)
    tgt = jnp.take_along_axis(logits, target[:, None], axis=-1)[:, 0]
    return lse - tgt


if __name__ == "__main__":
    # Small deterministic problem: batch=2, channels=4, 16x16 images, 8 classes.
    B, C, H, W = 2, 4, 16, 16
    NC = 8
    D = C * H * W

    key = jax.random.PRNGKey(0)
    k_x, k_t, k_w, k_b = jax.random.split(key, 4)

    x = jax.random.uniform(k_x, (B, C, H, W), dtype=jnp.float32)   # images in [0,1]
    target = jax.random.randint(k_t, (B,), 0, NC, dtype=jnp.int32)

    # Deterministic "model" parameters (linear classifier over flattened image).
    weight = 0.02 * jax.random.normal(k_w, (NC, D), dtype=jnp.float32)
    bias = 0.01 * jax.random.normal(k_b, (NC,), dtype=jnp.float32)

    # Dataset normalization statistics (per channel).
    mean_c = jnp.array([0.485, 0.456, 0.406, 0.5], dtype=jnp.float32)
    std_c = jnp.array([0.229, 0.224, 0.225, 0.25], dtype=jnp.float32)

    eps = 8.0 / 255.0
    step_size = 2.0 / 255.0
    iterations = 5

    adv = attacker_forward(x, target,
                           weight=weight, bias=bias,
                           mean_c=mean_c, std_c=std_c,
                           eps=eps, step_size=step_size,
                           iterations=iterations, targeted=False)
    adv = jax.block_until_ready(adv)

    # Feasibility checks: adversarial example stays in the threat model
    # (projection is exact f32, independent of the bf16 matmul path).
    assert adv.shape == x.shape and adv.dtype == jnp.float32
    assert bool(jnp.all(adv >= -1e-6)) and bool(jnp.all(adv <= 1.0 + 1e-6))
    assert bool(jnp.all(jnp.abs(adv - x) <= eps + 1e-5))

    # Semantic check: use_best tracking includes the clean iterate, so the
    # untargeted best-iterate loss can never be (meaningfully) lower than the
    # clean loss. Tolerance accounts for bf16 matmul inputs inside the kernel.
    clean_loss = _per_sample_ce(x, target, weight, bias, mean_c, std_c)
    adv_loss = _per_sample_ce(adv, target, weight, bias, mean_c, std_c)
    assert bool(jnp.all(adv_loss >= clean_loss - 5e-3))

    print("KERNEL_OK")
</pallas_src>

<mosaic_0001>
module attributes {stable_mosaic.version = 11 : i64} {
  func.func @_attack_kernel(%arg0: i32, %arg1: memref<2x1024xf32, #tpu.memory_space<vmem>>, %arg2: memref<2x8xf32, #tpu.memory_space<vmem>>, %arg3: memref<8x1024xbf16, #tpu.memory_space<vmem>>, %arg4: memref<1x8xf32, #tpu.memory_space<vmem>>, %arg5: memref<2x1024xf32, #tpu.memory_space<vmem>>, %arg6: memref<2x1xf32, #tpu.memory_space<vmem>>) attributes {dimension_semantics = [#tpu.dimension_semantics<parallel>], iteration_bounds = array<i64: 1>, scalar_prefetch = 0 : i64, scratch_operands = 1 : i64, tpu.core_type = #tpu.core_type<tc>, window_params = [{transform_indices = @transform_0, window_bounds = array<i64: 2, 1024>}, {transform_indices = @transform_1, window_bounds = array<i64: 2, 8>}, {pipeline_mode = #tpu.pipeline_mode<synchronous>, transform_indices = @transform_2, window_bounds = array<i64: 8, 1024>}, {pipeline_mode = #tpu.pipeline_mode<synchronous>, transform_indices = @transform_3, window_bounds = array<i64: 1, 8>}, {transform_indices = @transform_4, window_bounds = array<i64: 2, 1024>}]} {
    %c0 = arith.constant 0 : index
    %c0_0 = arith.constant 0 : index
    %0 = vector.load %arg1[%c0, %c0_0] : memref<2x1024xf32, #tpu.memory_space<vmem>>, vector<2x1024xf32>
    %c0_1 = arith.constant 0 : index
    %c0_2 = arith.constant 0 : index
    %1 = vector.load %arg2[%c0_1, %c0_2] : memref<2x8xf32, #tpu.memory_space<vmem>>, vector<2x8xf32>
    %c0_3 = arith.constant 0 : index
    %c0_4 = arith.constant 0 : index
    %2 = vector.load %arg3[%c0_3, %c0_4] : memref<8x1024xbf16, #tpu.memory_space<vmem>>, vector<8x1024xbf16>
    %c0_5 = arith.constant 0 : index
    %c0_6 = arith.constant 0 : index
    %3 = vector.load %arg4[%c0_5, %c0_6] : memref<1x8xf32, #tpu.memory_space<vmem>>, vector<1x8xf32>
    %cst = arith.constant 0.0313725509 : f32
    %4 = vector.broadcast %cst : f32 to vector<2x1024xf32>
    %5 = arith.subf %0, %4 : vector<2x1024xf32>
    %cst_7 = arith.constant 0.000000e+00 : f32
    %6 = vector.broadcast %cst_7 : f32 to vector<2x1024xf32>
    %7 = arith.maximumf %5, %6 : vector<2x1024xf32>
    %cst_8 = arith.constant 0.0313725509 : f32
    %8 = vector.broadcast %cst_8 : f32 to vector<2x1024xf32>
    %9 = arith.addf %0, %8 : vector<2x1024xf32>
    %cst_9 = arith.constant 1.000000e+00 : f32
    %10 = vector.broadcast %cst_9 : f32 to vector<2x1024xf32>
    %11 = arith.minimumf %9, %10 : vector<2x1024xf32>
    %cst_10 = arith.constant 0xFF800000 : f32
    %12 = vector.broadcast %cst_10 : f32 to vector<2x1xf32>
    %c0_11 = arith.constant 0 : index
    %c0_12 = arith.constant 0 : index
    %13 = vector.load %arg6[%c0_11, %c0_12] : memref<2x1xf32, #tpu.memory_space<vmem>>, vector<2x1xf32>
    tpu.vector_store %arg6[%c0_11, %c0_12], %12 {strides = array<i32>} : memref<2x1xf32, #tpu.memory_space<vmem>>, vector<2x1xf32>,
    %14 = arith.truncf %0 : vector<2x1024xf32> to vector<2x1024xbf16>
    %cst_13 = arith.constant dense<0.000000e+00> : vector<2x8xf32>
    %15 = tpu.matmul %14, %2, %cst_13 {dimension_numbers = #tpu.dot_dimension_numbers<[1], [1], [0], [0], [0, 0, 1, 0], [], []>} : vector<2x1024xbf16>, vector<8x1024xbf16>, vector<2x8xf32> -> vector<2x8xf32>
    %16 = vector.broadcast %3 : vector<1x8xf32> to vector<2x8xf32>
    %17 = arith.addf %15, %16 : vector<2x8xf32>
    %cst_14 = arith.constant dense<0xFF800000> : vector<2xf32>
    %18 = vector.multi_reduction <maximumf>, %17, %cst_14 [1] : vector<2x8xf32> to vector<2xf32>
    %19 = vector.shape_cast %18 : vector<2xf32> to vector<2x1xf32>
    %20 = vector.broadcast %19 : vector<2x1xf32> to vector<2x8xf32>
    %21 = arith.subf %17, %20 : vector<2x8xf32>
    %22 = math.exp %21 : vector<2x8xf32>
    %cst_15 = arith.constant dense<0.000000e+00> : vector<2xf32>
    %23 = vector.multi_reduction <add>, %22, %cst_15 [1] : vector<2x8xf32> to vector<2xf32>
    %24 = vector.shape_cast %23 : vector<2xf32> to vector<2x1xf32>
    %25 = math.log %24 : vector<2x1xf32>
    %26 = arith.addf %19, %25 : vector<2x1xf32>
    %27 = arith.mulf %17, %1 : vector<2x8xf32>
    %cst_16 = arith.constant dense<0.000000e+00> : vector<2xf32>
    %28 = vector.multi_reduction <add>, %27, %cst_16 [1] : vector<2x8xf32> to vector<2xf32>
    %29 = vector.shape_cast %28 : vector<2xf32> to vector<2x1xf32>
    %30 = arith.subf %26, %29 : vector<2x1xf32>
    %c0_17 = arith.constant 0 : index
    %c0_18 = arith.constant 0 : index
    %31 = vector.load %arg6[%c0_17, %c0_18] : memref<2x1xf32, #tpu.memory_space<vmem>>, vector<2x1xf32>
    %32 = arith.cmpf olt, %31, %30 : vector<2x1xf32>
    %33 = vector.shape_cast %32 : vector<2x1xi1> to vector<2x1xi1>
    %34 = vector.broadcast %33 : vector<2x1xi1> to vector<2x1024xi1>
    %c0_19 = arith.constant 0 : index
    %c0_20 = arith.constant 0 : index
    %35 = vector.load %arg5[%c0_19, %c0_20] : memref<2x1024xf32, #tpu.memory_space<vmem>>, vector<2x1024xf32>
    tpu.vector_store %arg5[%c0_19, %c0_20], %0 masked %34 {strides = array<i32>} : memref<2x1024xf32, #tpu.memory_space<vmem>>, vector<2x1024xf32>, vector<2x1024xi1>
    %c0_21 = arith.constant 0 : index
    %c0_22 = arith.constant 0 : index
    %36 = vector.load %arg6[%c0_21, %c0_22] : memref<2x1xf32, #tpu.memory_space<vmem>>, vector<2x1xf32>
    %37 = arith.select %32, %30, %36 : vector<2x1xi1>, vector<2x1xf32>
    %c0_23 = arith.constant 0 : index
    %c0_24 = arith.constant 0 : index
    %38 = vector.load %arg6[%c0_23, %c0_24] : memref<2x1xf32, #tpu.memory_space<vmem>>, vector<2x1xf32>
    tpu.vector_store %arg6[%c0_23, %c0_24], %37 {strides = array<i32>} : memref<2x1xf32, #tpu.memory_space<vmem>>, vector<2x1xf32>,
    %39 = tpu.reciprocal %24 {approx = true} : vector<2x1xf32> -> vector<2x1xf32>
    %40 = vector.broadcast %39 : vector<2x1xf32> to vector<2x8xf32>
    %41 = arith.mulf %22, %40 : vector<2x8xf32>
    %42 = arith.subf %41, %1 : vector<2x8xf32>
    %43 = arith.truncf %42 : vector<2x8xf32> to vector<2x8xbf16>
    %cst_25 = arith.constant dense<0.000000e+00> : vector<2x1024xf32>
    %44 = tpu.matmul %43, %2, %cst_25 {dimension_numbers = #tpu.dot_dimension_numbers<[1], [0], [0], [1], [0, 0, 1, 1], [], []>} : vector<2x8xbf16>, vector<8x1024xbf16>, vector<2x1024xf32> -> vector<2x1024xf32>
    %cst_26 = arith.constant 0.000000e+00 : f32
    %45 = vector.broadcast %cst_26 : f32 to vector<2x1024xf32>
    %46 = arith.cmpf oge, %44, %45 : vector<2x1024xf32>
    %cst_27 = arith.constant 0.00784313772 : f32
    %cst_28 = arith.constant -0.00784313772 : f32
    %47 = vector.broadcast %cst_27 : f32 to vector<2x1024xf32>
    %48 = vector.broadcast %cst_28 : f32 to vector<2x1024xf32>
    %49 = arith.select %46, %47, %48 : vector<2x1024xi1>, vector<2x1024xf32>
    %50 = arith.addf %0, %49 : vector<2x1024xf32>
    %51 = arith.maximumf %50, %7 : vector<2x1024xf32>
    %52 = arith.minimumf %51, %11 : vector<2x1024xf32>
    %53 = arith.truncf %52 : vector<2x1024xf32> to vector<2x1024xbf16>
    %cst_29 = arith.constant dense<0.000000e+00> : vector<2x8xf32>
    %54 = tpu.matmul %53, %2, %cst_29 {dimension_numbers = #tpu.dot_dimension_numbers<[1], [1], [0], [0], [0, 0, 1, 0], [], []>} : vector<2x1024xbf16>, vector<8x1024xbf16>, vector<2x8xf32> -> vector<2x8xf32>
    %55 = vector.broadcast %3 : vector<1x8xf32> to vector<2x8xf32>
    %56 = arith.addf %54, %55 : vector<2x8xf32>
    %cst_30 = arith.constant dense<0xFF800000> : vector<2xf32>
    %57 = vector.multi_reduction <maximumf>, %56, %cst_30 [1] : vector<2x8xf32> to vector<2xf32>
    %58 = vector.shape_cast %57 : vector<2xf32> to vector<2x1xf32>
    %59 = vector.broadcast %58 : vector<2x1xf32> to vector<2x8xf32>
    %60 = arith.subf %56, %59 : vector<2x8xf32>
    %61 = math.exp %60 : vector<2x8xf32>
    %cst_31 = arith.constant dense<0.000000e+00> : vector<2xf32>
    %62 = vector.multi_reduction <add>, %61, %cst_31 [1] : vector<2x8xf32> to vector<2xf32>
    %63 = vector.shape_cast %62 : vector<2xf32> to vector<2x1xf32>
    %64 = math.log %63 : vector<2x1xf32>
    %65 = arith.addf %58, %64 : vector<2x1xf32>
    %66 = arith.mulf %56, %1 : vector<2x8xf32>
    %cst_32 = arith.constant dense<0.000000e+00> : vector<2xf32>
    %67 = vector.multi_reduction <add>, %66, %cst_32 [1] : vector<2x8xf32> to vector<2xf32>
    %68 = vector.shape_cast %67 : vector<2xf32> to vector<2x1xf32>
    %69 = arith.subf %65, %68 : vector<2x1xf32>
    %c0_33 = arith.constant 0 : index
    %c0_34 = arith.constant 0 : index
    %70 = vector.load %arg6[%c0_33, %c0_34] : memref<2x1xf32, #tpu.memory_space<vmem>>, vector<2x1xf32>
    %71 = arith.cmpf olt, %70, %69 : vector<2x1xf32>
    %72 = vector.shape_cast %71 : vector<2x1xi1> to vector<2x1xi1>
    %73 = vector.broadcast %72 : vector<2x1xi1> to vector<2x1024xi1>
    %c0_35 = arith.constant 0 : index
    %c0_36 = arith.constant 0 : index
    %74 = vector.load %arg5[%c0_35, %c0_36] : memref<2x1024xf32, #tpu.memory_space<vmem>>, vector<2x1024xf32>
    tpu.vector_store %arg5[%c0_35, %c0_36], %52 masked %73 {strides = array<i32>} : memref<2x1024xf32, #tpu.memory_space<vmem>>, vector<2x1024xf32>, vector<2x1024xi1>
    %c0_37 = arith.constant 0 : index
    %c0_38 = arith.constant 0 : index
    %75 = vector.load %arg6[%c0_37, %c0_38] : memref<2x1xf32, #tpu.memory_space<vmem>>, vector<2x1xf32>
    %76 = arith.select %71, %69, %75 : vector<2x1xi1>, vector<2x1xf32>
    %c0_39 = arith.constant 0 : index
    %c0_40 = arith.constant 0 : index
    %77 = vector.load %arg6[%c0_39, %c0_40] : memref<2x1xf32, #tpu.memory_space<vmem>>, vector<2x1xf32>
    tpu.vector_store %arg6[%c0_39, %c0_40], %76 {strides = array<i32>} : memref<2x1xf32, #tpu.memory_space<vmem>>, vector<2x1xf32>,
    %78 = tpu.reciprocal %63 {approx = true} : vector<2x1xf32> -> vector<2x1xf32>
    %79 = vector.broadcast %78 : vector<2x1xf32> to vector<2x8xf32>
    %80 = arith.mulf %61, %79 : vector<2x8xf32>
    %81 = arith.subf %80, %1 : vector<2x8xf32>
    %82 = arith.truncf %81 : vector<2x8xf32> to vector<2x8xbf16>
    %cst_41 = arith.constant dense<0.000000e+00> : vector<2x1024xf32>
    %83 = tpu.matmul %82, %2, %cst_41 {dimension_numbers = #tpu.dot_dimension_numbers<[1], [0], [0], [1], [0, 0, 1, 1], [], []>} : vector<2x8xbf16>, vector<8x1024xbf16>, vector<2x1024xf32> -> vector<2x1024xf32>
    %cst_42 = arith.constant 0.000000e+00 : f32
    %84 = vector.broadcast %cst_42 : f32 to vector<2x1024xf32>
    %85 = arith.cmpf oge, %83, %84 : vector<2x1024xf32>
    %cst_43 = arith.constant 0.00784313772 : f32
    %cst_44 = arith.constant -0.00784313772 : f32
    %86 = vector.broadcast %cst_43 : f32 to vector<2x1024xf32>
    %87 = vector.broadcast %cst_44 : f32 to vector<2x1024xf32>
    %88 = arith.select %85, %86, %87 : vector<2x1024xi1>, vector<2x1024xf32>
    %89 = arith.addf %52, %88 : vector<2x1024xf32>
    %90 = arith.maximumf %89, %7 : vector<2x1024xf32>
    %91 = arith.minimumf %90, %11 : vector<2x1024xf32>
    %92 = arith.truncf %91 : vector<2x1024xf32> to vector<2x1024xbf16>
    %cst_45 = arith.constant dense<0.000000e+00> : vector<2x8xf32>
    %93 = tpu.matmul %92, %2, %cst_45 {dimension_numbers = #tpu.dot_dimension_numbers<[1], [1], [0], [0], [0, 0, 1, 0], [], []>} : vector<2x1024xbf16>, vector<8x1024xbf16>, vector<2x8xf32> -> vector<2x8xf32>
    %94 = vector.broadcast %3 : vector<1x8xf32> to vector<2x8xf32>
    %95 = arith.addf %93, %94 : vector<2x8xf32>
    %cst_46 = arith.constant dense<0xFF800000> : vector<2xf32>
    %96 = vector.multi_reduction <maximumf>, %95, %cst_46 [1] : vector<2x8xf32> to vector<2xf32>
    %97 = vector.shape_cast %96 : vector<2xf32> to vector<2x1xf32>
    %98 = vector.broadcast %97 : vector<2x1xf32> to vector<2x8xf32>
    %99 = arith.subf %95, %98 : vector<2x8xf32>
    %100 = math.exp %99 : vector<2x8xf32>
    %cst_47 = arith.constant dense<0.000000e+00> : vector<2xf32>
    %101 = vector.multi_reduction <add>, %100, %cst_47 [1] : vector<2x8xf32> to vector<2xf32>
    %102 = vector.shape_cast %101 : vector<2xf32> to vector<2x1xf32>
    %103 = math.log %102 : vector<2x1xf32>
    %104 = arith.addf %97, %103 : vector<2x1xf32>
    %105 = arith.mulf %95, %1 : vector<2x8xf32>
    %cst_48 = arith.constant dense<0.000000e+00> : vector<2xf32>
    %106 = vector.multi_reduction <add>, %105, %cst_48 [1] : vector<2x8xf32> to vector<2xf32>
    %107 = vector.shape_cast %106 : vector<2xf32> to vector<2x1xf32>
    %108 = arith.subf %104, %107 : vector<2x1xf32>
    %c0_49 = arith.constant 0 : index
    %c0_50 = arith.constant 0 : index
    %109 = vector.load %arg6[%c0_49, %c0_50] : memref<2x1xf32, #tpu.memory_space<vmem>>, vector<2x1xf32>
    %110 = arith.cmpf olt, %109, %108 : vector<2x1xf32>
    %111 = vector.shape_cast %110 : vector<2x1xi1> to vector<2x1xi1>
    %112 = vector.broadcast %111 : vector<2x1xi1> to vector<2x1024xi1>
    %c0_51 = arith.constant 0 : index
    %c0_52 = arith.constant 0 : index
    %113 = vector.load %arg5[%c0_51, %c0_52] : memref<2x1024xf32, #tpu.memory_space<vmem>>, vector<2x1024xf32>
    tpu.vector_store %arg5[%c0_51, %c0_52], %91 masked %112 {strides = array<i32>} : memref<2x1024xf32, #tpu.memory_space<vmem>>, vector<2x1024xf32>, vector<2x1024xi1>
    %c0_53 = arith.constant 0 : index
    %c0_54 = arith.constant 0 : index
    %114 = vector.load %arg6[%c0_53, %c0_54] : memref<2x1xf32, #tpu.memory_space<vmem>>, vector<2x1xf32>
    %115 = arith.select %110, %108, %114 : vector<2x1xi1>, vector<2x1xf32>
    %c0_55 = arith.constant 0 : index
    %c0_56 = arith.constant 0 : index
    %116 = vector.load %arg6[%c0_55, %c0_56] : memref<2x1xf32, #tpu.memory_space<vmem>>, vector<2x1xf32>
    tpu.vector_store %arg6[%c0_55, %c0_56], %115 {strides = array<i32>} : memref<2x1xf32, #tpu.memory_space<vmem>>, vector<2x1xf32>,
    %117 = tpu.reciprocal %102 {approx = true} : vector<2x1xf32> -> vector<2x1xf32>
    %118 = vector.broadcast %117 : vector<2x1xf32> to vector<2x8xf32>
    %119 = arith.mulf %100, %118 : vector<2x8xf32>
    %120 = arith.subf %119, %1 : vector<2x8xf32>
    %121 = arith.truncf %120 : vector<2x8xf32> to vector<2x8xbf16>
    %cst_57 = arith.constant dense<0.000000e+00> : vector<2x1024xf32>
    %122 = tpu.matmul %121, %2, %cst_57 {dimension_numbers = #tpu.dot_dimension_numbers<[1], [0], [0], [1], [0, 0, 1, 1], [], []>} : vector<2x8xbf16>, vector<8x1024xbf16>, vector<2x1024xf32> -> vector<2x1024xf32>
    %cst_58 = arith.constant 0.000000e+00 : f32
    %123 = vector.broadcast %cst_58 : f32 to vector<2x1024xf32>
    %124 = arith.cmpf oge, %122, %123 : vector<2x1024xf32>
    %cst_59 = arith.constant 0.00784313772 : f32
    %cst_60 = arith.constant -0.00784313772 : f32
    %125 = vector.broadcast %cst_59 : f32 to vector<2x1024xf32>
    %126 = vector.broadcast %cst_60 : f32 to vector<2x1024xf32>
    %127 = arith.select %124, %125, %126 : vector<2x1024xi1>, vector<2x1024xf32>
    %128 = arith.addf %91, %127 : vector<2x1024xf32>
    %129 = arith.maximumf %128, %7 : vector<2x1024xf32>
    %130 = arith.minimumf %129, %11 : vector<2x1024xf32>
    %131 = arith.truncf %130 : vector<2x1024xf32> to vector<2x1024xbf16>
    %cst_61 = arith.constant dense<0.000000e+00> : vector<2x8xf32>
    %132 = tpu.matmul %131, %2, %cst_61 {dimension_numbers = #tpu.dot_dimension_numbers<[1], [1], [0], [0], [0, 0, 1, 0], [], []>} : vector<2x1024xbf16>, vector<8x1024xbf16>, vector<2x8xf32> -> vector<2x8xf32>
    %133 = vector.broadcast %3 : vector<1x8xf32> to vector<2x8xf32>
    %134 = arith.addf %132, %133 : vector<2x8xf32>
    %cst_62 = arith.constant dense<0xFF800000> : vector<2xf32>
    %135 = vector.multi_reduction <maximumf>, %134, %cst_62 [1] : vector<2x8xf32> to vector<2xf32>
    %136 = vector.shape_cast %135 : vector<2xf32> to vector<2x1xf32>
    %137 = vector.broadcast %136 : vector<2x1xf32> to vector<2x8xf32>
    %138 = arith.subf %134, %137 : vector<2x8xf32>
    %139 = math.exp %138 : vector<2x8xf32>
    %cst_63 = arith.constant dense<0.000000e+00> : vector<2xf32>
    %140 = vector.multi_reduction <add>, %139, %cst_63 [1] : vector<2x8xf32> to vector<2xf32>
    %141 = vector.shape_cast %140 : vector<2xf32> to vector<2x1xf32>
    %142 = math.log %141 : vector<2x1xf32>
    %143 = arith.addf %136, %142 : vector<2x1xf32>
    %144 = arith.mulf %134, %1 : vector<2x8xf32>
    %cst_64 = arith.constant dense<0.000000e+00> : vector<2xf32>
    %145 = vector.multi_reduction <add>, %144, %cst_64 [1] : vector<2x8xf32> to vector<2xf32>
    %146 = vector.shape_cast %145 : vector<2xf32> to vector<2x1xf32>
    %147 = arith.subf %143, %146 : vector<2x1xf32>
    %c0_65 = arith.constant 0 : index
    %c0_66 = arith.constant 0 : index
    %148 = vector.load %arg6[%c0_65, %c0_66] : memref<2x1xf32, #tpu.memory_space<vmem>>, vector<2x1xf32>
    %149 = arith.cmpf olt, %148, %147 : vector<2x1xf32>
    %150 = vector.shape_cast %149 : vector<2x1xi1> to vector<2x1xi1>
    %151 = vector.broadcast %150 : vector<2x1xi1> to vector<2x1024xi1>
    %c0_67 = arith.constant 0 : index
    %c0_68 = arith.constant 0 : index
    %152 = vector.load %arg5[%c0_67, %c0_68] : memref<2x1024xf32, #tpu.memory_space<vmem>>, vector<2x1024xf32>
    tpu.vector_store %arg5[%c0_67, %c0_68], %130 masked %151 {strides = array<i32>} : memref<2x1024xf32, #tpu.memory_space<vmem>>, vector<2x1024xf32>, vector<2x1024xi1>
    %c0_69 = arith.constant 0 : index
    %c0_70 = arith.constant 0 : index
    %153 = vector.load %arg6[%c0_69, %c0_70] : memref<2x1xf32, #tpu.memory_space<vmem>>, vector<2x1xf32>
    %154 = arith.select %149, %147, %153 : vector<2x1xi1>, vector<2x1xf32>
    %c0_71 = arith.constant 0 : index
    %c0_72 = arith.constant 0 : index
    %155 = vector.load %arg6[%c0_71, %c0_72] : memref<2x1xf32, #tpu.memory_space<vmem>>, vector<2x1xf32>
    tpu.vector_store %arg6[%c0_71, %c0_72], %154 {strides = array<i32>} : memref<2x1xf32, #tpu.memory_space<vmem>>, vector<2x1xf32>,
    %156 = tpu.reciprocal %141 {approx = true} : vector<2x1xf32> -> vector<2x1xf32>
    %157 = vector.broadcast %156 : vector<2x1xf32> to vector<2x8xf32>
    %158 = arith.mulf %139, %157 : vector<2x8xf32>
    %159 = arith.subf %158, %1 : vector<2x8xf32>
    %160 = arith.truncf %159 : vector<2x8xf32> to vector<2x8xbf16>
    %cst_73 = arith.constant dense<0.000000e+00> : vector<2x1024xf32>
    %161 = tpu.matmul %160, %2, %cst_73 {dimension_numbers = #tpu.dot_dimension_numbers<[1], [0], [0], [1], [0, 0, 1, 1], [], []>} : vector<2x8xbf16>, vector<8x1024xbf16>, vector<2x1024xf32> -> vector<2x1024xf32>
    %cst_74 = arith.constant 0.000000e+00 : f32
    %162 = vector.broadcast %cst_74 : f32 to vector<2x1024xf32>
    %163 = arith.cmpf oge, %161, %162 : vector<2x1024xf32>
    %cst_75 = arith.constant 0.00784313772 : f32
    %cst_76 = arith.constant -0.00784313772 : f32
    %164 = vector.broadcast %cst_75 : f32 to vector<2x1024xf32>
    %165 = vector.broadcast %cst_76 : f32 to vector<2x1024xf32>
    %166 = arith.select %163, %164, %165 : vector<2x1024xi1>, vector<2x1024xf32>
    %167 = arith.addf %130, %166 : vector<2x1024xf32>
    %168 = arith.maximumf %167, %7 : vector<2x1024xf32>
    %169 = arith.minimumf %168, %11 : vector<2x1024xf32>
    %170 = arith.truncf %169 : vector<2x1024xf32> to vector<2x1024xbf16>
    %cst_77 = arith.constant dense<0.000000e+00> : vector<2x8xf32>
    %171 = tpu.matmul %170, %2, %cst_77 {dimension_numbers = #tpu.dot_dimension_numbers<[1], [1], [0], [0], [0, 0, 1, 0], [], []>} : vector<2x1024xbf16>, vector<8x1024xbf16>, vector<2x8xf32> -> vector<2x8xf32>
    %172 = vector.broadcast %3 : vector<1x8xf32> to vector<2x8xf32>
    %173 = arith.addf %171, %172 : vector<2x8xf32>
    %cst_78 = arith.constant dense<0xFF800000> : vector<2xf32>
    %174 = vector.multi_reduction <maximumf>, %173, %cst_78 [1] : vector<2x8xf32> to vector<2xf32>
    %175 = vector.shape_cast %174 : vector<2xf32> to vector<2x1xf32>
    %176 = vector.broadcast %175 : vector<2x1xf32> to vector<2x8xf32>
    %177 = arith.subf %173, %176 : vector<2x8xf32>
    %178 = math.exp %177 : vector<2x8xf32>
    %cst_79 = arith.constant dense<0.000000e+00> : vector<2xf32>
    %179 = vector.multi_reduction <add>, %178, %cst_79 [1] : vector<2x8xf32> to vector<2xf32>
    %180 = vector.shape_cast %179 : vector<2xf32> to vector<2x1xf32>
    %181 = math.log %180 : vector<2x1xf32>
    %182 = arith.addf %175, %181 : vector<2x1xf32>
    %183 = arith.mulf %173, %1 : vector<2x8xf32>
    %cst_80 = arith.constant dense<0.000000e+00> : vector<2xf32>
    %184 = vector.multi_reduction <add>, %183, %cst_80 [1] : vector<2x8xf32> to vector<2xf32>
    %185 = vector.shape_cast %184 : vector<2xf32> to vector<2x1xf32>
    %186 = arith.subf %182, %185 : vector<2x1xf32>
    %c0_81 = arith.constant 0 : index
    %c0_82 = arith.constant 0 : index
    %187 = vector.load %arg6[%c0_81, %c0_82] : memref<2x1xf32, #tpu.memory_space<vmem>>, vector<2x1xf32>
    %188 = arith.cmpf olt, %187, %186 : vector<2x1xf32>
    %189 = vector.shape_cast %188 : vector<2x1xi1> to vector<2x1xi1>
    %190 = vector.broadcast %189 : vector<2x1xi1> to vector<2x1024xi1>
    %c0_83 = arith.constant 0 : index
    %c0_84 = arith.constant 0 : index
    %191 = vector.load %arg5[%c0_83, %c0_84] : memref<2x1024xf32, #tpu.memory_space<vmem>>, vector<2x1024xf32>
    tpu.vector_store %arg5[%c0_83, %c0_84], %169 masked %190 {strides = array<i32>} : memref<2x1024xf32, #tpu.memory_space<vmem>>, vector<2x1024xf32>, vector<2x1024xi1>
    %c0_85 = arith.constant 0 : index
    %c0_86 = arith.constant 0 : index
    %192 = vector.load %arg6[%c0_85, %c0_86] : memref<2x1xf32, #tpu.memory_space<vmem>>, vector<2x1xf32>
    %193 = arith.select %188, %186, %192 : vector<2x1xi1>, vector<2x1xf32>
    %c0_87 = arith.constant 0 : index
    %c0_88 = arith.constant 0 : index
    %194 = vector.load %arg6[%c0_87, %c0_88] : memref<2x1xf32, #tpu.memory_space<vmem>>, vector<2x1xf32>
    tpu.vector_store %arg6[%c0_87, %c0_88], %193 {strides = array<i32>} : memref<2x1xf32, #tpu.memory_space<vmem>>, vector<2x1xf32>,
    %195 = tpu.reciprocal %180 {approx = true} : vector<2x1xf32> -> vector<2x1xf32>
    %196 = vector.broadcast %195 : vector<2x1xf32> to vector<2x8xf32>
    %197 = arith.mulf %178, %196 : vector<2x8xf32>
    %198 = arith.subf %197, %1 : vector<2x8xf32>
    %199 = arith.truncf %198 : vector<2x8xf32> to vector<2x8xbf16>
    %cst_89 = arith.constant dense<0.000000e+00> : vector<2x1024xf32>
    %200 = tpu.matmul %199, %2, %cst_89 {dimension_numbers = #tpu.dot_dimension_numbers<[1], [0], [0], [1], [0, 0, 1, 1], [], []>} : vector<2x8xbf16>, vector<8x1024xbf16>, vector<2x1024xf32> -> vector<2x1024xf32>
    %cst_90 = arith.constant 0.000000e+00 : f32
    %201 = vector.broadcast %cst_90 : f32 to vector<2x1024xf32>
    %202 = arith.cmpf oge, %200, %201 : vector<2x1024xf32>
    %cst_91 = arith.constant 0.00784313772 : f32
    %cst_92 = arith.constant -0.00784313772 : f32
    %203 = vector.broadcast %cst_91 : f32 to vector<2x1024xf32>
    %204 = vector.broadcast %cst_92 : f32 to vector<2x1024xf32>
    %205 = arith.select %202, %203, %204 : vector<2x1024xi1>, vector<2x1024xf32>
    %206 = arith.addf %169, %205 : vector<2x1024xf32>
    %207 = arith.maximumf %206, %7 : vector<2x1024xf32>
    %208 = arith.minimumf %207, %11 : vector<2x1024xf32>
    %209 = arith.truncf %208 : vector<2x1024xf32> to vector<2x1024xbf16>
    %cst_93 = arith.constant dense<0.000000e+00> : vector<2x8xf32>
    %210 = tpu.matmul %209, %2, %cst_93 {dimension_numbers = #tpu.dot_dimension_numbers<[1], [1], [0], [0], [0, 0, 1, 0], [], []>} : vector<2x1024xbf16>, vector<8x1024xbf16>, vector<2x8xf32> -> vector<2x8xf32>
    %211 = vector.broadcast %3 : vector<1x8xf32> to vector<2x8xf32>
    %212 = arith.addf %210, %211 : vector<2x8xf32>
    %cst_94 = arith.constant dense<0xFF800000> : vector<2xf32>
    %213 = vector.multi_reduction <maximumf>, %212, %cst_94 [1] : vector<2x8xf32> to vector<2xf32>
    %214 = vector.shape_cast %213 : vector<2xf32> to vector<2x1xf32>
    %215 = vector.broadcast %214 : vector<2x1xf32> to vector<2x8xf32>
    %216 = arith.subf %212, %215 : vector<2x8xf32>
    %217 = math.exp %216 : vector<2x8xf32>
    %cst_95 = arith.constant dense<0.000000e+00> : vector<2xf32>
    %218 = vector.multi_reduction <add>, %217, %cst_95 [1] : vector<2x8xf32> to vector<2xf32>
    %219 = vector.shape_cast %218 : vector<2xf32> to vector<2x1xf32>
    %220 = math.log %219 : vector<2x1xf32>
    %221 = arith.addf %214, %220 : vector<2x1xf32>
    %222 = arith.mulf %212, %1 : vector<2x8xf32>
    %cst_96 = arith.constant dense<0.000000e+00> : vector<2xf32>
    %223 = vector.multi_reduction <add>, %222, %cst_96 [1] : vector<2x8xf32> to vector<2xf32>
    %224 = vector.shape_cast %223 : vector<2xf32> to vector<2x1xf32>
    %225 = arith.subf %221, %224 : vector<2x1xf32>
    %c0_97 = arith.constant 0 : index
    %c0_98 = arith.constant 0 : index
    %226 = vector.load %arg6[%c0_97, %c0_98] : memref<2x1xf32, #tpu.memory_space<vmem>>, vector<2x1xf32>
    %227 = arith.cmpf olt, %226, %225 : vector<2x1xf32>
    %228 = vector.shape_cast %227 : vector<2x1xi1> to vector<2x1xi1>
    %229 = vector.broadcast %228 : vector<2x1xi1> to vector<2x1024xi1>
    %c0_99 = arith.constant 0 : index
    %c0_100 = arith.constant 0 : index
    %230 = vector.load %arg5[%c0_99, %c0_100] : memref<2x1024xf32, #tpu.memory_space<vmem>>, vector<2x1024xf32>
    tpu.vector_store %arg5[%c0_99, %c0_100], %208 masked %229 {strides = array<i32>} : memref<2x1024xf32, #tpu.memory_space<vmem>>, vector<2x1024xf32>, vector<2x1024xi1>
    %c0_101 = arith.constant 0 : index
    %c0_102 = arith.constant 0 : index
    %231 = vector.load %arg6[%c0_101, %c0_102] : memref<2x1xf32, #tpu.memory_space<vmem>>, vector<2x1xf32>
    %232 = arith.select %227, %225, %231 : vector<2x1xi1>, vector<2x1xf32>
    %c0_103 = arith.constant 0 : index
    %c0_104 = arith.constant 0 : index
    %233 = vector.load %arg6[%c0_103, %c0_104] : memref<2x1xf32, #tpu.memory_space<vmem>>, vector<2x1xf32>
    tpu.vector_store %arg6[%c0_103, %c0_104], %232 {strides = array<i32>} : memref<2x1xf32, #tpu.memory_space<vmem>>, vector<2x1xf32>,
    return
  }
  func.func @transform_0(%arg0: i32) -> (i32, i32) {
    %c0_i32 = arith.constant 0 : i32
    %c0_i32_0 = arith.constant 0 : i32
    return %arg0, %c0_i32 : i32, i32
  }
  func.func @transform_1(%arg0: i32) -> (i32, i32) {
    %c0_i32 = arith.constant 0 : i32
    %c0_i32_0 = arith.constant 0 : i32
    return %arg0, %c0_i32 : i32, i32
  }
  func.func @transform_2(%arg0: i32) -> (i32, i32) {
    %c0_i32 = arith.constant 0 : i32
    %c0_i32_0 = arith.constant 0 : i32
    %c0_i32_1 = arith.constant 0 : i32
    return %c0_i32, %c0_i32_0 : i32, i32
  }
  func.func @transform_3(%arg0: i32) -> (i32, i32) {
    %c0_i32 = arith.constant 0 : i32
    %c0_i32_0 = arith.constant 0 : i32
    %c0_i32_1 = arith.constant 0 : i32
    return %c0_i32, %c0_i32_0 : i32, i32
  }
  func.func @transform_4(%arg0: i32) -> (i32, i32) {
    %c0_i32 = arith.constant 0 : i32
    %c0_i32_0 = arith.constant 0 : i32
    return %arg0, %c0_i32 : i32, i32
  }
}

</mosaic_0001>

<bundles_post_ra>
// kernel: tpu_custom_call.1
= control target key start
LH: loop header
LB: loop body
LE: loop exit
PB: predicated region body
PF: predicated region fallthrough
CT: control target
= control target key end

     0   :  { %9 = vsyncpa [#allocation4], 0  ;;  %s2693_s0 = inlined_call_operand.hbm [shape: f32[2,1024], index: 0, kind: input, shape index: {}]   ;;  %s2694_s1 = inlined_call_operand.hbm [shape: f32[2,8], index: 1, kind: input, shape index: {}]   ;;  %s2695_s2 = inlined_call_operand.hbm [shape: bf16[8,1024], index: 2, kind: input, shape index: {}]   ;;  %s2696_s3 = inlined_call_operand.vmem [shape: f32[1,8], index: 3, kind: input, shape index: {}]   ;;  %s2697_s4 = inlined_call_operand.hbm [shape: f32[2,1024], index: 4, kind: output, shape index: {}]  }
   0x1   :  { %10 = vsyncpa [#allocation7], 0  ;;  %s28_s17 = sshll.u32 %s2694_s1, 4  ;;  %s29_s17 = int_to_ptr.hbm [resolvable:$true] %s28_s17 }
   0x2   :  { %11 = vsyncpa [#allocation5], 0  ;;  %s2131_s18 = smov [#allocation6]   ;;  %s17_s22 = sshll.u32 %s2693_s0, 4  ;;  %s18_s22 = int_to_ptr.hbm [resolvable:$true] %s17_s22 }
   0x3   :  { %s30_s19 = sshll.u32 %s2131_s18, 4  ;;  %s2132_s23 = smov [#allocation3]   ;;  %s31_s19 = int_to_ptr.vmem [resolvable:$true] %s30_s19 }
   0x4   :  { %33 = dma.hbm_to_vmem [thread:$0]  %s29_s17, 32, %s31_s19, [#allocation7]  }
   0x5   :  { %s19_s24 = sshll.u32 %s2132_s23, 4  ;;  %s39_s27 = sshll.u32 %s2695_s2, 4  ;;  %s20_s24 = int_to_ptr.vmem [resolvable:$true] %s19_s24  ;;  %s40_s27 = int_to_ptr.hbm [resolvable:$true] %s39_s27 }
   0x6   :  { %22 = dma.hbm_to_vmem [thread:$0]  %s18_s22, 256, %s20_s24, [#allocation4]  }
   0x7   :  { %s2133_s1 = smov [#allocation8]  }
   0x8   :  { %s41_s28 = sshll.u32 %s2133_s1, 4  ;;  %s42_s28 = int_to_ptr.vmem [resolvable:$true] %s41_s28 }
   0x9   :  { %44 = dma.hbm_to_vmem [thread:$0]  %s40_s27, 512, %s42_s28, [#allocation7]  }
   0xa   :  { %2125 = dma.done.wait [#allocation4], 256  }
   0xb   :  { %2126 = vsyncadd [#allocation4], 4294967040 }
   0xc   :  { %2127 = dma.done.wait [#allocation7], 544  }
   0xd   :  { %2128 = vsyncadd [#allocation7], 4294966752  ;;  %v63_v0 = vld [vmem:[#allocation8] sm:$0xff]  ;;  %v64_v1 = vld [vmem:[#allocation8 + $0x8] sm:$0xff]  ;;  %vm242_vm0 = vcmask 58368   ;;  %vm286_vm1 = vcmask 1043456  }
   0xe   :  { %v2173_v2 = vld [vmem:[#allocation3] sm:$0xff]  ;;  %v114_v3 = vunpack.c.l.b16 %v63_v0  ;;  %v115_v4 = vunpack.c.h.b16 %v63_v0  ;;  %v116_v5 = vunpack.c.l.b16 %v64_v1  ;;  %v117_v6 = vunpack.c.h.b16 %v64_v1  ;;  %v66_v7 = vld [vmem:[#allocation8 + $0x18] sm:$0xff]  ;;  %v2206_v38 = vld [vmem:[%s2696_s3] ss:$0 sm:$0xff]  ;;  %s1928_s8 = sshll.u32 %s2697_s4, 4  ;;  %s1929_s8 = int_to_ptr.hbm [resolvable:$true] %s1928_s8 }
   0xf   :  { %80 = vst [vmem:[#allocation1] ss:$4 sm:$0xff] %v2173_v2  ;;  %v65_v8 = vld [vmem:[#allocation8 + $0x10] sm:$0xff]  ;;  %v120_v10 = vunpack.c.l.b16 %v66_v7  ;;  %v121_v12 = vunpack.c.h.b16 %v66_v7  ;;  %vm282_vm2 = vcmask 64512   ;;  %vm445_vm7 = vcmask 1041408  }
  0x10   :  { %v2176_v9 = vld [vmem:[#allocation3 + $0x8] sm:$0xff]  ;;  %v118_v11 = vunpack.c.l.b16 %v65_v8  ;;  %v119_v13 = vunpack.c.h.b16 %v65_v8  ;;  %v2179_v14 = vpack.c.b16 %v114_v3, %v114_v3  ;;  %v2181_v15 = vpack.c.b16 %v115_v4, %v115_v4 }
  0x11   :  { %82 = vst [vmem:[#allocation1 + $0x20] ss:$4 sm:$0xff] %v2176_v9  ;;  %v2183_v16 = vpack.c.b16 %v116_v5, %v116_v5  ;;  %v2185_v17 = vpack.c.b16 %v117_v6, %v117_v6  ;;  %v2187_v18 = vpack.c.b16 %v120_v10, %v120_v10  ;;  %v2191_v20 = vpack.c.b16 %v121_v12, %v121_v12 }
  0x12   :  { %v2189_v19 = vpack.c.b16 %v118_v11, %v118_v11  ;;  %v2193_v21 = vpack.c.b16 %v119_v13, %v119_v13  ;;  %145 = vmatpush.bf16.xpose.msra.mxu0 %v2179_v14  ;;  %158 = vmatpush.bf16.xpose.msra.mxu1 %v2181_v15  ;;  %v2230_v8 = vsel %vm286_vm1, %v2181_v15, 0  ;;  %v2234_v10 = vsel %vm286_vm1, %v2179_v14, 0 }
  0x13   :  { %171 = vmatpush.bf16.xpose.msra.mxu2 %v2183_v16  ;;  %184 = vmatpush.bf16.xpose.msra.mxu3 %v2185_v17  ;;  %v2215_v0 = vsel %vm286_vm1, %v2183_v16, 0  ;;  %v2219_v1 = vsel %vm286_vm1, %v2185_v17, 0  ;;  %v2240_v11 = vsel %vm286_vm1, %v2187_v18, 0  ;;  %v2244_v12 = vsel %vm286_vm1, %v2191_v20, 0 }
  0x14   :  { %v2248_v13 = vsel %vm286_vm1, %v2193_v21, 0  ;;  %vm447_vm8 = vcmask 1045508  }
  0x16   :  { %v83_v22 = vld.sshfl [vmem:[#allocation1] sm:$0xff pattern:$0x73625140]  ;;  %v84_v23 = vld.sshfl [vmem:[#allocation1 + $0x8] sm:$0xff pattern:$0x73625140] }
  0x17   :  { %v99_v24 = vpack.c.bf16 %v83_v22, %v83_v22  ;;  %v100_v25 = vpack.c.bf16 %v84_v23, %v84_v23  ;;  %v85_v26 = vld.sshfl [vmem:[#allocation1 + $0x10] sm:$0xff pattern:$0x73625140]  ;;  %v86_v27 = vld.sshfl [vmem:[#allocation1 + $0x18] sm:$0xff pattern:$0x73625140] }
  0x18   :  { %v101_v28 = vpack.c.bf16 %v85_v26, %v85_v26  ;;  %v102_v29 = vpack.c.bf16 %v86_v27, %v86_v27  ;;  %v87_v30 = vld.sshfl [vmem:[#allocation1 + $0x20] sm:$0xff pattern:$0x73625140]  ;;  %v88_v31 = vld.sshfl [vmem:[#allocation1 + $0x28] sm:$0xff pattern:$0x73625140] }
  0x19   :  { %146 = vmatmul.bf16.vlgmr.msra.gmra.mxu0 %v99_v24  ;;  %159 = vmatmul.bf16.vlgmr.msra.gmra.mxu1 %v100_v25  ;;  %v89_v32 = vld.sshfl [vmem:[#allocation1 + $0x30] sm:$0xff pattern:$0x73625140]  ;;  %v90_v33 = vld.sshfl [vmem:[#allocation1 + $0x38] sm:$0xff pattern:$0x73625140]  ;;  %v103_v34 = vpack.c.bf16 %v87_v30, %v87_v30  ;;  %v104_v35 = vpack.c.bf16 %v88_v31, %v88_v31 }
  0x1a   :  { %197 = vmatpush.bf16.xpose.msrb.mxu0 %v2189_v19  ;;  %210 = vmatpush.bf16.xpose.msrb.mxu1 %v2193_v21  ;;  %v105_v36 = vpack.c.bf16 %v89_v32, %v89_v32  ;;  %v106_v37 = vpack.c.bf16 %v90_v33, %v90_v33  ;;  %v2252_v22 = vsel %vm286_vm1, %v2189_v19, 0  ;;  %v2261_v26 = vld [vmem:[#allocation6] sm:$0x3]  ;;  %v2134_v31 = vmov -0.007843138  }
  0x1b   :  { %223 = vmatpush.bf16.xpose.msrb.mxu2 %v2187_v18  ;;  %236 = vmatpush.bf16.xpose.msrb.mxu3 %v2191_v20 }
  0x1c   :  { %172 = vmatmul.bf16.vlgmr.msra.gmra.mxu2 %v101_v28  ;;  %185 = vmatmul.bf16.vlgmr.msra.gmra.mxu3 %v102_v29 }
  0x22   :  { %331 = vmatpush.bf16.msra.mxu1 %v2230_v8  ;;  %318 = vmatpush.bf16.msra.mxu0 %v2234_v10 }
  0x23   :  { %344 = vmatpush.bf16.msra.mxu2 %v2215_v0  ;;  %357 = vmatpush.bf16.msra.mxu3 %v2219_v1 }
  0x29   :  { %198 = vmatmul.bf16.vlgmr.msrb.gmra.mxu0 %v103_v34  ;;  %211 = vmatmul.bf16.vlgmr.msrb.gmra.mxu1 %v104_v35  ;;  %v1939_v34 = vadd.f32 -0.03137255, %v2173_v2 }
  0x2a   :  { %383 = vmatpush.bf16.msrb.mxu1 %v2248_v13  ;;  %370 = vmatpush.bf16.msrb.mxu0 %v2252_v22 }
  0x2c   :  { %224 = vmatmul.bf16.vlgmr.msrb.gmra.mxu2 %v105_v36  ;;  %237 = vmatmul.bf16.vlgmr.msrb.gmra.mxu3 %v106_v37 }
  0x2d   :  { %396 = vmatpush.bf16.msrb.mxu2 %v2240_v11  ;;  %409 = vmatpush.bf16.msrb.mxu3 %v2244_v12 }
  0x96   :  { %v147_v39 = vpop.f32.mrf.mxu0  ;;  %v160_v40 = vpop.f32.mrf.mxu1 }
  0x97   :  { %v148_v41 = vadd.f32 %v2206_v38, %v147_v39 }
  0x99   :  { %v161_v44 = vadd.f32 %v160_v40, %v148_v41 }
  0x9e   :  { %v149_v45 = vpop.f32.mrf.mxu0  ;;  %v162_v46 = vpop.f32.mrf.mxu1 }
  0x9f   :  { %v173_v42 = vpop.f32.mrf.mxu2  ;;  %v186_v43 = vpop.f32.mrf.mxu3 }
  0xa0   :  { %v174_v47 = vadd.f32 %v173_v42, %v161_v44 }
  0xa2   :  { %v187_v50 = vadd.f32 %v186_v43, %v174_v47  ;;  %v72_v43 = vadd.f32 0.03137255, %v2173_v2  ;;  %v2287_v47 = vmax.f32 %v1939_v34, 0.0 }
  0xa6   :  { %v199_v51 = vpop.f32.mrf.mxu0  ;;  %v212_v52 = vpop.f32.mrf.mxu1 }
  0xa7   :  { %v175_v48 = vpop.f32.mrf.mxu2  ;;  %v188_v49 = vpop.f32.mrf.mxu3  ;;  %v200_v53 = vadd.f32 %v199_v51, %v187_v50  ;;  %v2291_v50 = vmin.f32 %v72_v43, 1.0 }
  0xa9   :  { %v213_v54 = vadd.f32 %v212_v52, %v200_v53 }
  0xae   :  { %v201_v58 = vpop.f32.mrf.mxu0  ;;  %v214_v59 = vpop.f32.mrf.mxu1 }
  0xaf   :  { %v225_v55 = vpop.f32.mrf.mxu2  ;;  %v238_v56 = vpop.f32.mrf.mxu3  ;;  %v1940_v59 = vadd.f32 -0.03137255, %v2176_v9 }
  0xb0   :  { %v226_v57 = vadd.f32 %v225_v55, %v213_v54 }
  0xb2   :  { %v2209_v60 = vadd.f32 %v238_v56, %v226_v57 }
  0xb4   :  { %v243_v61 = vsel %vm242_vm0, %v2209_v60, -inf }
  0xb5   :  { %244 = vmax.xlane.f32.xlu0 %v243_v61 }
  0xb7   :  { %v227_v62 = vpop.f32.mrf.mxu2  ;;  %v240_v63 = vpop.f32.mrf.mxu3 }
 0x128   :  { %v2223_v3 = vpop.xlane.xlu0 %244 }
 0x129   :  { %v246_v4 = vsub.f32 %v2209_v60, %v2223_v3 }
 0x12b   :  { %v247_v5 = vmul.f32 1.442695, %v246_v4 }
 0x12d   :  { %1993 = vpow2.f32 %v247_v5 }
 0x133   :  { %v1994_v6 = vpop.eup %1993 }
 0x134   :  { %v249_v7 = vsel %vm242_vm0, %v1994_v6, 0.0 }
 0x135   :  { %250 = vadd.xlane.f32.xlu0 %v249_v7  ;;  %v73_v7 = vadd.f32 0.03137255, %v2176_v9 }
 0x137   :  { %v2310_v43 = vmin.f32 %v73_v7, 1.0 }
 0x1a8   :  { %v2258_v23 = vpop.xlane.xlu0 %250 }
 0x1a9   :  { %1995 = vrcp.f32 %v2258_v23 }
 0x1af   :  { %v1996_v24 = vpop.eup %1995 }
 0x1b0   :  { %v279_v25 = vmul.f32 %v1996_v24, %v1994_v6 }
 0x1b2   :  { %v280_v27 = vsub.f32 %v279_v25, %v2261_v26 }
 0x1b4   :  { %v281_v28 = vpack.c.bf16 %v280_v27, %v280_v27 }
 0x1b6   :  { %1941 = vmatmul.msk.bf16.vlgmr.msra.gmra.mxu0 %vm282_vm2, %v281_v28  ;;  %1942 = vmatmul.msk.bf16.vlgmr.msra.gmra.mxu1 %vm282_vm2, %v281_v28 }
 0x1b7   :  { %1943 = vmatmul.msk.bf16.vlgmr.msra.gmra.mxu2 %vm282_vm2, %v281_v28  ;;  %1944 = vmatmul.msk.bf16.vlgmr.msra.gmra.mxu3 %vm282_vm2, %v281_v28 }
 0x1b8   :  { %523 = vmatpush.bf16.xpose.msra.mxu2 %v2183_v16  ;;  %497 = vmatpush.bf16.xpose.msra.mxu0 %v2179_v14 }
 0x1b9   :  { %536 = vmatpush.bf16.xpose.msra.mxu3 %v2185_v17  ;;  %510 = vmatpush.bf16.xpose.msra.mxu1 %v2181_v15 }
 0x1c6   :  { %1945 = vmatmul.msk.bf16.vlgmr.msrb.gmra.mxu0 %vm282_vm2, %v281_v28  ;;  %1946 = vmatmul.msk.bf16.vlgmr.msrb.gmra.mxu1 %vm282_vm2, %v281_v28 }
 0x1c7   :  { %1947 = vmatmul.msk.bf16.vlgmr.msrb.gmra.mxu2 %vm282_vm2, %v281_v28  ;;  %1948 = vmatmul.msk.bf16.vlgmr.msrb.gmra.mxu3 %vm282_vm2, %v281_v28  ;;  %v2305_v28 = vmax.f32 %v1940_v59, 0.0 }
 0x1c8   :  { %575 = vmatpush.bf16.xpose.msrb.mxu2 %v2187_v18  ;;  %549 = vmatpush.bf16.xpose.msrb.mxu0 %v2189_v19 }
 0x1c9   :  { %588 = vmatpush.bf16.xpose.msrb.mxu3 %v2191_v20  ;;  %562 = vmatpush.bf16.xpose.msrb.mxu1 %v2193_v21 }
 0x233   :  { %v320_v29 = vpop.f32.mrf.mxu0  ;;  %v333_v30 = vpop.f32.mrf.mxu1 }
 0x234   :  { %vm416_vm3 = vcmp.ge.f32.partialorder %v333_v30, 0.0  ;;  %vm415_vm4 = vcmp.ge.f32.partialorder %v320_v29, 0.0 }
 0x235   :  { %v424_v32 = vsel %vm416_vm3, 0.007843138, %v2134_v31  ;;  %v423_v45 = vsel %vm415_vm4, 0.007843138, %v2134_v31 }
 0x236   :  { %v439_v36 = vrot.slane %v424_v32, 6 }
 0x238   :  { %v446_v46 = vsel %vm445_vm7, %v423_v45, %v439_v36 }
 0x23a   :  { %v346_v33 = vpop.f32.mrf.mxu2  ;;  %v359_v35 = vpop.f32.mrf.mxu3 }
 0x23b   :  { %vm417_vm5 = vcmp.ge.f32.partialorder %v346_v33, 0.0  ;;  %vm418_vm6 = vcmp.ge.f32.partialorder %v359_v35, 0.0  ;;  %v322_v37 = vpop.f32.mrf.mxu0  ;;  %v335_v39 = vpop.f32.mrf.mxu1 }
 0x23c   :  { %v425_v40 = vsel %vm417_vm5, 0.007843138, %v2134_v31  ;;  %v426_v41 = vsel %vm418_vm6, 0.007843138, %v2134_v31 }
 0x23d   :  { %v440_v42 = vrot.slane %v425_v40, 4  ;;  %v441_v44 = vrot.slane %v426_v41, 2 }
 0x23f   :  { %v448_v48 = vsel %vm447_vm8, %v440_v42, %v441_v44 }
 0x240   :  { %v449_v49 = vsel %vm286_vm1, %v446_v46, %v448_v48 }
 0x241   :  { %v455_v51 = vadd.f32 %v449_v49, %v2173_v2 }
 0x242   :  { %v348_v52 = vpop.f32.mrf.mxu2  ;;  %v361_v53 = vpop.f32.mrf.mxu3 }
 0x243   :  { %v457_v54 = vmax.f32 %v455_v51, %v2287_v47  ;;  %v372_v55 = vpop.f32.mrf.mxu0  ;;  %v385_v56 = vpop.f32.mrf.mxu1 }
 0x244   :  { %vm420_vm9 = vcmp.ge.f32.partialorder %v385_v56, 0.0  ;;  %vm419_vm10 = vcmp.ge.f32.partialorder %v372_v55, 0.0 }
 0x245   :  { %v2296_v57 = vmin.f32 %v457_v54, %v2291_v50  ;;  %v428_v58 = vsel %vm420_vm9, 0.007843138, %v2134_v31  ;;  %v427_v25 = vsel %vm419_vm10, 0.007843138, %v2134_v31 }
 0x246   :  { %v442_v63 = vrot.slane %v428_v58, 6 }
 0x247   :  { %463 = vst [vmem:[#allocation1] ss:$4 sm:$0xff] %v2296_v57 }
 0x248   :  { %v450_v33 = vsel %vm445_vm7, %v427_v25, %v442_v63 }
 0x24a   :  { %v398_v61 = vpop.f32.mrf.mxu2  ;;  %v411_v62 = vpop.f32.mrf.mxu3 }
 0x24b   :  { %vm421_vm11 = vcmp.ge.f32.partialorder %v398_v61, 0.0  ;;  %vm422_vm12 = vcmp.ge.f32.partialorder %v411_v62, 0.0  ;;  %v374_v4 = vpop.f32.mrf.mxu0  ;;  %v387_v5 = vpop.f32.mrf.mxu1 }
 0x24c   :  { %v429_v6 = vsel %vm421_vm11, 0.007843138, %v2134_v31  ;;  %v430_v24 = vsel %vm422_vm12, 0.007843138, %v2134_v31 }
 0x24d   :  { %v443_v27 = vrot.slane %v429_v6, 4  ;;  %v444_v29 = vrot.slane %v430_v24, 2 }
 0x24e   :  { %v466_v30 = vld.sshfl [vmem:[#allocation1] sm:$0xff pattern:$0x73625140]  ;;  %v467_v32 = vld.sshfl [vmem:[#allocation1 + $0x8] sm:$0xff pattern:$0x73625140] }
 0x24f   :  { %v451_v34 = vsel %vm447_vm8, %v443_v27, %v444_v29  ;;  %v482_v35 = vpack.c.bf16 %v466_v30, %v466_v30  ;;  %v483_v36 = vpack.c.bf16 %v467_v32, %v467_v32  ;;  %v468_v37 = vld.sshfl [vmem:[#allocation1 + $0x10] sm:$0xff pattern:$0x73625140]  ;;  %v469_v39 = vld.sshfl [vmem:[#allocation1 + $0x18] sm:$0xff pattern:$0x73625140] }
 0x250   :  { %v452_v40 = vsel %vm286_vm1, %v450_v33, %v451_v34  ;;  %v484_v41 = vpack.c.bf16 %v468_v37, %v468_v37  ;;  %v485_v42 = vpack.c.bf16 %v469_v39, %v469_v39 }
 0x251   :  { %v456_v44 = vadd.f32 %v452_v40, %v2176_v9  ;;  %498 = vmatmul.bf16.vlgmr.msra.gmra.mxu0 %v482_v35  ;;  %511 = vmatmul.bf16.vlgmr.msra.gmra.mxu1 %v483_v36 }
 0x252   :  { %524 = vmatmul.bf16.vlgmr.msra.gmra.mxu2 %v484_v41  ;;  %537 = vmatmul.bf16.vlgmr.msra.gmra.mxu3 %v485_v42  ;;  %v400_v45 = vpop.f32.mrf.mxu2  ;;  %v413_v46 = vpop.f32.mrf.mxu3 }
 0x253   :  { %v458_v48 = vmax.f32 %v456_v44, %v2305_v28  ;;  %669 = vmatpush.bf16.msra.mxu2 %v2215_v0  ;;  %682 = vmatpush.bf16.msra.mxu3 %v2219_v1 }
 0x254   :  { %656 = vmatpush.bf16.msra.mxu1 %v2230_v8  ;;  %643 = vmatpush.bf16.msra.mxu0 %v2234_v10 }
 0x255   :  { %v2319_v49 = vmin.f32 %v458_v48, %v2310_v43 }
 0x257   :  { %465 = vst [vmem:[#allocation1 + $0x20] ss:$4 sm:$0xff] %v2319_v49 }
 0x25e   :  { %v470_v51 = vld.sshfl [vmem:[#allocation1 + $0x20] sm:$0xff pattern:$0x73625140]  ;;  %v471_v52 = vld.sshfl [vmem:[#allocation1 + $0x28] sm:$0xff pattern:$0x73625140] }
 0x25f   :  { %v486_v53 = vpack.c.bf16 %v470_v51, %v470_v51  ;;  %v487_v54 = vpack.c.bf16 %v471_v52, %v471_v52  ;;  %v472_v55 = vld.sshfl [vmem:[#allocation1 + $0x30] sm:$0xff pattern:$0x73625140]  ;;  %v473_v56 = vld.sshfl [vmem:[#allocation1 + $0x38] sm:$0xff pattern:$0x73625140] }
 0x260   :  { %v488_v58 = vpack.c.bf16 %v472_v55, %v472_v55  ;;  %v489_v59 = vpack.c.bf16 %v473_v56, %v473_v56 }
 0x261   :  { %550 = vmatmul.bf16.vlgmr.msrb.gmra.mxu0 %v486_v53  ;;  %563 = vmatmul.bf16.vlgmr.msrb.gmra.mxu1 %v487_v54 }
 0x262   :  { %576 = vmatmul.bf16.vlgmr.msrb.gmra.mxu2 %v488_v58  ;;  %589 = vmatmul.bf16.vlgmr.msrb.gmra.mxu3 %v489_v59 }
 0x263   :  { %721 = vmatpush.bf16.msrb.mxu2 %v2240_v11  ;;  %734 = vmatpush.bf16.msrb.mxu3 %v2244_v12 }
 0x264   :  { %708 = vmatpush.bf16.msrb.mxu1 %v2248_v13  ;;  %695 = vmatpush.bf16.msrb.mxu0 %v2252_v22 }
 0x2ce   :  { %v499_v61 = vpop.f32.mrf.mxu0  ;;  %v512_v62 = vpop.f32.mrf.mxu1 }
 0x2cf   :  { %v500_v63 = vadd.f32 %v2206_v38, %v499_v61 }
 0x2d1   :  { %v513_v24 = vadd.f32 %v512_v62, %v500_v63 }
 0x2d5   :  { %v525_v4 = vpop.f32.mrf.mxu2  ;;  %v538_v5 = vpop.f32.mrf.mxu3 }
 0x2d6   :  { %v501_v6 = vpop.f32.mrf.mxu0  ;;  %v514_v7 = vpop.f32.mrf.mxu1  ;;  %v526_v25 = vadd.f32 %v525_v4, %v513_v24 }
 0x2d8   :  { %v539_v30 = vadd.f32 %v538_v5, %v526_v25 }
 0x2dd   :  { %v527_v27 = vpop.f32.mrf.mxu2  ;;  %v540_v29 = vpop.f32.mrf.mxu3 }
 0x2de   :  { %v551_v32 = vpop.f32.mrf.mxu0  ;;  %v564_v33 = vpop.f32.mrf.mxu1 }
 0x2df   :  { %v552_v34 = vadd.f32 %v551_v32, %v539_v30 }
 0x2e1   :  { %v565_v35 = vadd.f32 %v564_v33, %v552_v34 }
 0x2e5   :  { %v577_v36 = vpop.f32.mrf.mxu2  ;;  %v590_v37 = vpop.f32.mrf.mxu3 }
 0x2e6   :  { %v578_v39 = vadd.f32 %v577_v36, %v565_v35  ;;  %v553_v40 = vpop.f32.mrf.mxu0  ;;  %v566_v41 = vpop.f32.mrf.mxu1 }
 0x2e8   :  { %v2327_v42 = vadd.f32 %v590_v37, %v578_v39 }
 0x2ea   :  { %v594_v44 = vsel %vm242_vm0, %v2327_v42, -inf }
 0x2eb   :  { %595 = vmax.xlane.f32.xlu1 %v594_v44 }
 0x2ed   :  { %v579_v45 = vpop.f32.mrf.mxu2  ;;  %v592_v46 = vpop.f32.mrf.mxu3 }
 0x35e   :  { %v2331_v48 = vpop.xlane.xlu1 %595 }
 0x35f   :  { %v597_v51 = vsub.f32 %v2327_v42, %v2331_v48 }
 0x361   :  { %v598_v52 = vmul.f32 1.442695, %v597_v51 }
 0x363   :  { %1997 = vpow2.f32 %v598_v52 }
 0x369   :  { %v1998_v53 = vpop.eup %1997 }
 0x36a   :  { %v600_v54 = vsel %vm242_vm0, %v1998_v53, 0.0 }
 0x36b   :  { %601 = vadd.xlane.f32.xlu1 %v600_v54 }
 0x3de   :  { %v2336_v55 = vpop.xlane.xlu1 %601 }
 0x3df   :  { %1999 = vrcp.f32 %v2336_v55 }
 0x3e5   :  { %v2000_v56 = vpop.eup %1999 }
 0x3e6   :  { %v630_v58 = vmul.f32 %v2000_v56, %v1998_v53 }
 0x3e8   :  { %v631_v59 = vsub.f32 %v630_v58, %v2261_v26 }
 0x3ea   :  { %v632_v61 = vpack.c.bf16 %v631_v59, %v631_v59 }
 0x3ec   :  { %1949 = vmatmul.msk.bf16.vlgmr.msra.gmra.mxu0 %vm282_vm2, %v632_v61  ;;  %1950 = vmatmul.msk.bf16.vlgmr.msra.gmra.mxu1 %vm282_vm2, %v632_v61 }
 0x3ed   :  { %1951 = vmatmul.msk.bf16.vlgmr.msra.gmra.mxu2 %vm282_vm2, %v632_v61  ;;  %1952 = vmatmul.msk.bf16.vlgmr.msra.gmra.mxu3 %vm282_vm2, %v632_v61 }
 0x3ee   :  { %846 = vmatpush.bf16.xpose.msra.mxu2 %v2183_v16  ;;  %820 = vmatpush.bf16.xpose.msra.mxu0 %v2179_v14 }
 0x3ef   :  { %859 = vmatpush.bf16.xpose.msra.mxu3 %v2185_v17  ;;  %833 = vmatpush.bf16.xpose.msra.mxu1 %v2181_v15 }
 0x3fc   :  { %1953 = vmatmul.msk.bf16.vlgmr.msrb.gmra.mxu0 %vm282_vm2, %v632_v61  ;;  %1954 = vmatmul.msk.bf16.vlgmr.msrb.gmra.mxu1 %vm282_vm2, %v632_v61 }
 0x3fd   :  { %1955 = vmatmul.msk.bf16.vlgmr.msrb.gmra.mxu2 %vm282_vm2, %v632_v61  ;;  %1956 = vmatmul.msk.bf16.vlgmr.msrb.gmra.mxu3 %vm282_vm2, %v632_v61 }
 0x3fe   :  { %898 = vmatpush.bf16.xpose.msrb.mxu2 %v2187_v18  ;;  %872 = vmatpush.bf16.xpose.msrb.mxu0 %v2189_v19 }
 0x3ff   :  { %911 = vmatpush.bf16.xpose.msrb.mxu3 %v2191_v20  ;;  %885 = vmatpush.bf16.xpose.msrb.mxu1 %v2193_v21 }
 0x469   :  { %v645_v62 = vpop.f32.mrf.mxu0  ;;  %v658_v63 = vpop.f32.mrf.mxu1 }
 0x46a   :  { %vm741_vm13 = vcmp.ge.f32.partialorder %v658_v63, 0.0  ;;  %vm740_vm14 = vcmp.ge.f32.partialorder %v645_v62, 0.0 }
 0x46b   :  { %v749_v4 = vsel %vm741_vm13, 0.007843138, %v2134_v31  ;;  %v748_v33 = vsel %vm740_vm14, 0.007843138, %v2134_v31 }
 0x46c   :  { %v764_v7 = vrot.slane %v749_v4, 6 }
 0x46e   :  { %v770_v34 = vsel %vm445_vm7, %v748_v33, %v764_v7 }
 0x470   :  { %v671_v5 = vpop.f32.mrf.mxu2  ;;  %v684_v6 = vpop.f32.mrf.mxu3 }
 0x471   :  { %vm742_vm15 = vcmp.ge.f32.partialorder %v671_v5, 0.0  ;;  %vm743_vm3 = vcmp.ge.f32.partialorder %v684_v6, 0.0  ;;  %v647_v24 = vpop.f32.mrf.mxu0  ;;  %v660_v25 = vpop.f32.mrf.mxu1 }
 0x472   :  { %v750_v27 = vsel %vm742_vm15, 0.007843138, %v2134_v31  ;;  %v751_v29 = vsel %vm743_vm3, 0.007843138, %v2134_v31 }
 0x473   :  { %v765_v30 = vrot.slane %v750_v27, 4  ;;  %v766_v32 = vrot.slane %v751_v29, 2 }
 0x475   :  { %v771_v35 = vsel %vm447_vm8, %v765_v30, %v766_v32 }
 0x476   :  { %v772_v36 = vsel %vm286_vm1, %v770_v34, %v771_v35 }
 0x477   :  { %v778_v37 = vadd.f32 %v772_v36, %v2296_v57 }
 0x478   :  { %v673_v39 = vpop.f32.mrf.mxu2  ;;  %v686_v40 = vpop.f32.mrf.mxu3 }
 0x479   :  { %v780_v41 = vmax.f32 %v778_v37, %v2287_v47  ;;  %v697_v44 = vpop.f32.mrf.mxu0  ;;  %v710_v45 = vpop.f32.mrf.mxu1 }
 0x47a   :  { %vm745_vm4 = vcmp.ge.f32.partialorder %v710_v45, 0.0  ;;  %vm744_vm5 = vcmp.ge.f32.partialorder %v697_v44, 0.0 }
 0x47b   :  { %v2366_v46 = vmin.f32 %v780_v41, %v2291_v50  ;;  %v753_v51 = vsel %vm745_vm4, 0.007843138, %v2134_v31  ;;  %v752_v62 = vsel %vm744_vm5, 0.007843138, %v2134_v31  ;;  %vm76_vm5 = vcmask 1024  }
 0x47c   :  { %v767_v54 = vrot.slane %v753_v51, 6 }
 0x47d   :  { %786 = vst [vmem:[#allocation1] ss:$4 sm:$0xff] %v2366_v46 }
 0x47e   :  { %v773_v7 = vsel %vm445_vm7, %v752_v62, %v767_v54 }
 0x480   :  { %v723_v52 = vpop.f32.mrf.mxu2  ;;  %v736_v53 = vpop.f32.mrf.mxu3 }
 0x481   :  { %vm746_vm6 = vcmp.ge.f32.partialorder %v723_v52, 0.0  ;;  %vm747_vm9 = vcmp.ge.f32.partialorder %v736_v53, 0.0  ;;  %v699_v56 = vpop.f32.mrf.mxu0  ;;  %v712_v58 = vpop.f32.mrf.mxu1 }
 0x482   :  { %v754_v59 = vsel %vm746_vm6, 0.007843138, %v2134_v31  ;;  %v755_v61 = vsel %vm747_vm9, 0.007843138, %v2134_v31 }
 0x483   :  { %v768_v63 = vrot.slane %v754_v59, 4  ;;  %v769_v4 = vrot.slane %v755_v61, 2 }
 0x484   :  { %v789_v5 = vld.sshfl [vmem:[#allocation1] sm:$0xff pattern:$0x73625140]  ;;  %v790_v6 = vld.sshfl [vmem:[#allocation1 + $0x8] sm:$0xff pattern:$0x73625140] }
 0x485   :  { %v774_v24 = vsel %vm447_vm8, %v768_v63, %v769_v4  ;;  %v805_v25 = vpack.c.bf16 %v789_v5, %v789_v5  ;;  %v806_v27 = vpack.c.bf16 %v790_v6, %v790_v6  ;;  %v791_v29 = vld.sshfl [vmem:[#allocation1 + $0x10] sm:$0xff pattern:$0x73625140]  ;;  %v792_v30 = vld.sshfl [vmem:[#allocation1 + $0x18] sm:$0xff pattern:$0x73625140] }
 0x486   :  { %v775_v32 = vsel %vm286_vm1, %v773_v7, %v774_v24  ;;  %v807_v33 = vpack.c.bf16 %v791_v29, %v791_v29  ;;  %v808_v34 = vpack.c.bf16 %v792_v30, %v792_v30 }
 0x487   :  { %v779_v35 = vadd.f32 %v775_v32, %v2319_v49  ;;  %821 = vmatmul.bf16.vlgmr.msra.gmra.mxu0 %v805_v25  ;;  %834 = vmatmul.bf16.vlgmr.msra.gmra.mxu1 %v806_v27 }
 0x488   :  { %847 = vmatmul.bf16.vlgmr.msra.gmra.mxu2 %v807_v33  ;;  %860 = vmatmul.bf16.vlgmr.msra.gmra.mxu3 %v808_v34  ;;  %v725_v36 = vpop.f32.mrf.mxu2  ;;  %v738_v37 = vpop.f32.mrf.mxu3 }
 0x489   :  { %v781_v39 = vmax.f32 %v779_v35, %v2305_v28  ;;  %992 = vmatpush.bf16.msra.mxu2 %v2215_v0  ;;  %1005 = vmatpush.bf16.msra.mxu3 %v2219_v1 }
 0x48a   :  { %979 = vmatpush.bf16.msra.mxu1 %v2230_v8  ;;  %966 = vmatpush.bf16.msra.mxu0 %v2234_v10 }
 0x48b   :  { %v2383_v40 = vmin.f32 %v781_v39, %v2310_v43 }
 0x48d   :  { %788 = vst [vmem:[#allocation1 + $0x20] ss:$4 sm:$0xff] %v2383_v40 }
 0x494   :  { %v793_v41 = vld.sshfl [vmem:[#allocation1 + $0x20] sm:$0xff pattern:$0x73625140]  ;;  %v794_v44 = vld.sshfl [vmem:[#allocation1 + $0x28] sm:$0xff pattern:$0x73625140] }
 0x495   :  { %v809_v45 = vpack.c.bf16 %v793_v41, %v793_v41  ;;  %v810_v51 = vpack.c.bf16 %v794_v44, %v794_v44  ;;  %v795_v52 = vld.sshfl [vmem:[#allocation1 + $0x30] sm:$0xff pattern:$0x73625140]  ;;  %v796_v53 = vld.sshfl [vmem:[#allocation1 + $0x38] sm:$0xff pattern:$0x73625140] }
 0x496   :  { %v811_v54 = vpack.c.bf16 %v795_v52, %v795_v52  ;;  %v812_v56 = vpack.c.bf16 %v796_v53, %v796_v53 }
 0x497   :  { %873 = vmatmul.bf16.vlgmr.msrb.gmra.mxu0 %v809_v45  ;;  %886 = vmatmul.bf16.vlgmr.msrb.gmra.mxu1 %v810_v51 }
 0x498   :  { %899 = vmatmul.bf16.vlgmr.msrb.gmra.mxu2 %v811_v54  ;;  %912 = vmatmul.bf16.vlgmr.msrb.gmra.mxu3 %v812_v56 }
 0x499   :  { %1044 = vmatpush.bf16.msrb.mxu2 %v2240_v11  ;;  %1057 = vmatpush.bf16.msrb.mxu3 %v2244_v12 }
 0x49a   :  { %1031 = vmatpush.bf16.msrb.mxu1 %v2248_v13  ;;  %1018 = vmatpush.bf16.msrb.mxu0 %v2252_v22 }
 0x504   :  { %v822_v58 = vpop.f32.mrf.mxu0  ;;  %v835_v59 = vpop.f32.mrf.mxu1 }
 0x505   :  { %v823_v61 = vadd.f32 %v2206_v38, %v822_v58 }
 0x507   :  { %v836_v6 = vadd.f32 %v835_v59, %v823_v61 }
 0x50b   :  { %v848_v62 = vpop.f32.mrf.mxu2  ;;  %v861_v63 = vpop.f32.mrf.mxu3 }
 0x50c   :  { %v824_v4 = vpop.f32.mrf.mxu0  ;;  %v837_v5 = vpop.f32.mrf.mxu1  ;;  %v849_v7 = vadd.f32 %v848_v62, %v836_v6 }
 0x50e   :  { %v862_v27 = vadd.f32 %v861_v63, %v849_v7 }
 0x513   :  { %v850_v24 = vpop.f32.mrf.mxu2  ;;  %v863_v25 = vpop.f32.mrf.mxu3 }
 0x514   :  { %v874_v29 = vpop.f32.mrf.mxu0  ;;  %v887_v30 = vpop.f32.mrf.mxu1 }
 0x515   :  { %v875_v32 = vadd.f32 %v874_v29, %v862_v27 }
 0x517   :  { %v888_v33 = vadd.f32 %v887_v30, %v875_v32 }
 0x51b   :  { %v900_v34 = vpop.f32.mrf.mxu2  ;;  %v913_v35 = vpop.f32.mrf.mxu3 }
 0x51c   :  { %v901_v36 = vadd.f32 %v900_v34, %v888_v33  ;;  %v876_v37 = vpop.f32.mrf.mxu0  ;;  %v889_v39 = vpop.f32.mrf.mxu1 }
 0x51e   :  { %v2391_v41 = vadd.f32 %v913_v35, %v901_v36 }
 0x520   :  { %v917_v44 = vsel %vm242_vm0, %v2391_v41, -inf }
 0x521   :  { %918 = vmax.xlane.f32.xlu2 %v917_v44 }
 0x523   :  { %v902_v45 = vpop.f32.mrf.mxu2  ;;  %v915_v51 = vpop.f32.mrf.mxu3 }
 0x594   :  { %v2395_v52 = vpop.xlane.xlu2 %918 }
 0x595   :  { %v920_v53 = vsub.f32 %v2391_v41, %v2395_v52 }
 0x597   :  { %v921_v54 = vmul.f32 1.442695, %v920_v53 }
 0x599   :  { %2001 = vpow2.f32 %v921_v54 }
 0x59f   :  { %v2002_v56 = vpop.eup %2001 }
 0x5a0   :  { %v923_v58 = vsel %vm242_vm0, %v2002_v56, 0.0 }
 0x5a1   :  { %924 = vadd.xlane.f32.xlu2 %v923_v58 }
 0x614   :  { %v2400_v59 = vpop.xlane.xlu2 %924 }
 0x615   :  { %2003 = vrcp.f32 %v2400_v59 }
 0x61b   :  { %v2004_v61 = vpop.eup %2003 }
 0x61c   :  { %v953_v62 = vmul.f32 %v2004_v61, %v2002_v56 }
 0x61e   :  { %v954_v63 = vsub.f32 %v953_v62, %v2261_v26 }
 0x620   :  { %v955_v4 = vpack.c.bf16 %v954_v63, %v954_v63 }
 0x622   :  { %1957 = vmatmul.msk.bf16.vlgmr.msra.gmra.mxu0 %vm282_vm2, %v955_v4  ;;  %1958 = vmatmul.msk.bf16.vlgmr.msra.gmra.mxu1 %vm282_vm2, %v955_v4 }
 0x623   :  { %1959 = vmatmul.msk.bf16.vlgmr.msra.gmra.mxu2 %vm282_vm2, %v955_v4  ;;  %1960 = vmatmul.msk.bf16.vlgmr.msra.gmra.mxu3 %vm282_vm2, %v955_v4 }
 0x624   :  { %1169 = vmatpush.bf16.xpose.msra.mxu2 %v2183_v16  ;;  %1143 = vmatpush.bf16.xpose.msra.mxu0 %v2179_v14 }
 0x625   :  { %1182 = vmatpush.bf16.xpose.msra.mxu3 %v2185_v17  ;;  %1156 = vmatpush.bf16.xpose.msra.mxu1 %v2181_v15 }
 0x632   :  { %1961 = vmatmul.msk.bf16.vlgmr.msrb.gmra.mxu0 %vm282_vm2, %v955_v4  ;;  %1962 = vmatmul.msk.bf16.vlgmr.msrb.gmra.mxu1 %vm282_vm2, %v955_v4 }
 0x633   :  { %1963 = vmatmul.msk.bf16.vlgmr.msrb.gmra.mxu2 %vm282_vm2, %v955_v4  ;;  %1964 = vmatmul.msk.bf16.vlgmr.msrb.gmra.mxu3 %vm282_vm2, %v955_v4 }
 0x634   :  { %1221 = vmatpush.bf16.xpose.msrb.mxu2 %v2187_v18  ;;  %1195 = vmatpush.bf16.xpose.msrb.mxu0 %v2189_v19 }
 0x635   :  { %1234 = vmatpush.bf16.xpose.msrb.mxu3 %v2191_v20  ;;  %1208 = vmatpush.bf16.xpose.msrb.mxu1 %v2193_v21 }
 0x69f   :  { %v968_v5 = vpop.f32.mrf.mxu0  ;;  %v981_v6 = vpop.f32.mrf.mxu1 }
 0x6a0   :  { %vm1064_vm10 = vcmp.ge.f32.partialorder %v981_v6, 0.0  ;;  %vm1063_vm11 = vcmp.ge.f32.partialorder %v968_v5, 0.0 }
 0x6a1   :  { %v1072_v7 = vsel %vm1064_vm10, 0.007843138, %v2134_v31  ;;  %v1071_v36 = vsel %vm1063_vm11, 0.007843138, %v2134_v31 }
 0x6a2   :  { %v1087_v27 = vrot.slane %v1072_v7, 6 }
 0x6a4   :  { %v1093_v37 = vsel %vm445_vm7, %v1071_v36, %v1087_v27 }
 0x6a6   :  { %v994_v24 = vpop.f32.mrf.mxu2  ;;  %v1007_v25 = vpop.f32.mrf.mxu3 }
 0x6a7   :  { %vm1065_vm12 = vcmp.ge.f32.partialorder %v994_v24, 0.0  ;;  %vm1066_vm13 = vcmp.ge.f32.partialorder %v1007_v25, 0.0  ;;  %v970_v29 = vpop.f32.mrf.mxu0  ;;  %v983_v30 = vpop.f32.mrf.mxu1 }
 0x6a8   :  { %v1073_v32 = vsel %vm1065_vm12, 0.007843138, %v2134_v31  ;;  %v1074_v33 = vsel %vm1066_vm13, 0.007843138, %v2134_v31 }
 0x6a9   :  { %v1088_v34 = vrot.slane %v1073_v32, 4  ;;  %v1089_v35 = vrot.slane %v1074_v33, 2 }
 0x6ab   :  { %v1094_v39 = vsel %vm447_vm8, %v1088_v34, %v1089_v35 }
 0x6ac   :  { %v1095_v44 = vsel %vm286_vm1, %v1093_v37, %v1094_v39 }
 0x6ad   :  { %v1101_v45 = vadd.f32 %v1095_v44, %v2366_v46 }
 0x6ae   :  { %v996_v51 = vpop.f32.mrf.mxu2  ;;  %v1009_v53 = vpop.f32.mrf.mxu3 }
 0x6af   :  { %v1103_v54 = vmax.f32 %v1101_v45, %v2287_v47  ;;  %v1020_v56 = vpop.f32.mrf.mxu0  ;;  %v1033_v58 = vpop.f32.mrf.mxu1 }
 0x6b0   :  { %vm1068_vm14 = vcmp.ge.f32.partialorder %v1033_v58, 0.0  ;;  %vm1067_vm15 = vcmp.ge.f32.partialorder %v1020_v56, 0.0 }
 0x6b1   :  { %v2430_v61 = vmin.f32 %v1103_v54, %v2291_v50  ;;  %v1076_v62 = vsel %vm1068_vm14, 0.007843138, %v2134_v31  ;;  %v1075_v27 = vsel %vm1067_vm15, 0.007843138, %v2134_v31 }
 0x6b2   :  { %v1090_v5 = vrot.slane %v1076_v62, 6 }
 0x6b3   :  { %1109 = vst [vmem:[#allocation1] ss:$4 sm:$0xff] %v2430_v61 }
 0x6b4   :  { %v1096_v34 = vsel %vm445_vm7, %v1075_v27, %v1090_v5 }
 0x6b6   :  { %v1046_v63 = vpop.f32.mrf.mxu2  ;;  %v1059_v4 = vpop.f32.mrf.mxu3 }
 0x6b7   :  { %vm1069_vm3 = vcmp.ge.f32.partialorder %v1046_v63, 0.0  ;;  %vm1070_vm4 = vcmp.ge.f32.partialorder %v1059_v4, 0.0  ;;  %v1022_v6 = vpop.f32.mrf.mxu0  ;;  %v1035_v7 = vpop.f32.mrf.mxu1 }
 0x6b8   :  { %v1077_v24 = vsel %vm1069_vm3, 0.007843138, %v2134_v31  ;;  %v1078_v25 = vsel %vm1070_vm4, 0.007843138, %v2134_v31 }
 0x6b9   :  { %v1091_v29 = vrot.slane %v1077_v24, 4  ;;  %v1092_v30 = vrot.slane %v1078_v25, 2 }
 0x6ba   :  { %v1112_v32 = vld.sshfl [vmem:[#allocation1] sm:$0xff pattern:$0x73625140]  ;;  %v1113_v33 = vld.sshfl [vmem:[#allocation1 + $0x8] sm:$0xff pattern:$0x73625140] }
 0x6bb   :  { %v1097_v35 = vsel %vm447_vm8, %v1091_v29, %v1092_v30  ;;  %v1128_v36 = vpack.c.bf16 %v1112_v32, %v1112_v32  ;;  %v1129_v37 = vpack.c.bf16 %v1113_v33, %v1113_v33  ;;  %v1114_v39 = vld.sshfl [vmem:[#allocation1 + $0x10] sm:$0xff pattern:$0x73625140]  ;;  %v1115_v44 = vld.sshfl [vmem:[#allocation1 + $0x18] sm:$0xff pattern:$0x73625140] }
 0x6bc   :  { %v1098_v45 = vsel %vm286_vm1, %v1096_v34, %v1097_v35  ;;  %v1130_v51 = vpack.c.bf16 %v1114_v39, %v1114_v39  ;;  %v1131_v53 = vpack.c.bf16 %v1115_v44, %v1115_v44 }
 0x6bd   :  { %v1102_v54 = vadd.f32 %v1098_v45, %v2383_v40  ;;  %1144 = vmatmul.bf16.vlgmr.msra.gmra.mxu0 %v1128_v36  ;;  %1157 = vmatmul.bf16.vlgmr.msra.gmra.mxu1 %v1129_v37 }
 0x6be   :  { %1170 = vmatmul.bf16.vlgmr.msra.gmra.mxu2 %v1130_v51  ;;  %1183 = vmatmul.bf16.vlgmr.msra.gmra.mxu3 %v1131_v53  ;;  %v1048_v56 = vpop.f32.mrf.mxu2  ;;  %v1061_v58 = vpop.f32.mrf.mxu3 }
 0x6bf   :  { %v1104_v62 = vmax.f32 %v1102_v54, %v2305_v28  ;;  %1315 = vmatpush.bf16.msra.mxu2 %v2215_v0  ;;  %1328 = vmatpush.bf16.msra.mxu3 %v2219_v1 }
 0x6c0   :  { %1302 = vmatpush.bf16.msra.mxu1 %v2230_v8  ;;  %1289 = vmatpush.bf16.msra.mxu0 %v2234_v10 }
 0x6c1   :  { %v2447_v63 = vmin.f32 %v1104_v62, %v2310_v43 }
 0x6c3   :  { %1111 = vst [vmem:[#allocation1 + $0x20] ss:$4 sm:$0xff] %v2447_v63 }
 0x6ca   :  { %v1116_v4 = vld.sshfl [vmem:[#allocation1 + $0x20] sm:$0xff pattern:$0x73625140]  ;;  %v1117_v5 = vld.sshfl [vmem:[#allocation1 + $0x28] sm:$0xff pattern:$0x73625140] }
 0x6cb   :  { %v1132_v6 = vpack.c.bf16 %v1116_v4, %v1116_v4  ;;  %v1133_v7 = vpack.c.bf16 %v1117_v5, %v1117_v5  ;;  %v1118_v24 = vld.sshfl [vmem:[#allocation1 + $0x30] sm:$0xff pattern:$0x73625140]  ;;  %v1119_v25 = vld.sshfl [vmem:[#allocation1 + $0x38] sm:$0xff pattern:$0x73625140] }
 0x6cc   :  { %v1134_v27 = vpack.c.bf16 %v1118_v24, %v1118_v24  ;;  %v1135_v29 = vpack.c.bf16 %v1119_v25, %v1119_v25 }
 0x6cd   :  { %1196 = vmatmul.bf16.vlgmr.msrb.gmra.mxu0 %v1132_v6  ;;  %1209 = vmatmul.bf16.vlgmr.msrb.gmra.mxu1 %v1133_v7 }
 0x6ce   :  { %1222 = vmatmul.bf16.vlgmr.msrb.gmra.mxu2 %v1134_v27  ;;  %1235 = vmatmul.bf16.vlgmr.msrb.gmra.mxu3 %v1135_v29 }
 0x6cf   :  { %1367 = vmatpush.bf16.msrb.mxu2 %v2240_v11  ;;  %1380 = vmatpush.bf16.msrb.mxu3 %v2244_v12 }
 0x6d0   :  { %1354 = vmatpush.bf16.msrb.mxu1 %v2248_v13  ;;  %1341 = vmatpush.bf16.msrb.mxu0 %v2252_v22 }
 0x73a   :  { %v1145_v30 = vpop.f32.mrf.mxu0  ;;  %v1158_v32 = vpop.f32.mrf.mxu1 }
 0x73b   :  { %v1146_v33 = vadd.f32 %v2206_v38, %v1145_v30 }
 0x73d   :  { %v1159_v39 = vadd.f32 %v1158_v32, %v1146_v33 }
 0x741   :  { %v1171_v34 = vpop.f32.mrf.mxu2  ;;  %v1184_v35 = vpop.f32.mrf.mxu3 }
 0x742   :  { %v1147_v36 = vpop.f32.mrf.mxu0  ;;  %v1160_v37 = vpop.f32.mrf.mxu1  ;;  %v1172_v44 = vadd.f32 %v1171_v34, %v1159_v39  ;;  %v606_v39 = vmul.f32 %v2327_v42, %v2261_v26 }
 0x743   :  { %v255_v36 = vmul.f32 %v2209_v60, %v2261_v26  ;;  %v2135_v60 = vmov -inf  }
 0x744   :  { %v1185_v53 = vadd.f32 %v1184_v35, %v1172_v44  ;;  %v607_v44 = vsel %vm242_vm0, %v606_v39, 0.0  ;;  %77 = vst.msk [vmem:[#allocation2] sm:$0x3] %vm76_vm5, %v2135_v60 }
 0x745   :  { %v256_v37 = vsel %vm242_vm0, %v255_v36, 0.0 }
 0x749   :  { %v1173_v45 = vpop.f32.mrf.mxu2  ;;  %v1186_v51 = vpop.f32.mrf.mxu3 }
 0x74a   :  { %v1197_v54 = vpop.f32.mrf.mxu0  ;;  %v1210_v56 = vpop.f32.mrf.mxu1  ;;  %v929_v45 = vmul.f32 %v2391_v41, %v2261_v26 }
 0x74b   :  { %v1198_v58 = vadd.f32 %v1197_v54, %v1185_v53 }
 0x74c   :  { %v930_v51 = vsel %vm242_vm0, %v929_v45, 0.0 }
 0x74d   :  { %v1211_v62 = vadd.f32 %v1210_v56, %v1198_v58  ;;  %v2136_v56 = vmov 0  }
 0x74e   :  { %1991 = vset.pattern.permute.xlu1 %v2136_v56  ;;  %1989 = vset.pattern.permute.xlu0 %v2136_v56 }
 0x74f   :  { %1990 = vset.pattern.permute.xlu2 %v2136_v56 }
 0x751   :  { %v1223_v4 = vpop.f32.mrf.mxu2  ;;  %v1236_v5 = vpop.f32.mrf.mxu3 }
 0x752   :  { %v1224_v6 = vadd.f32 %v1223_v4, %v1211_v62  ;;  %v1199_v7 = vpop.f32.mrf.mxu0  ;;  %v1212_v24 = vpop.f32.mrf.mxu1 }
 0x753   :  { %v275_v24 = vld [vmem:[#allocation2] sm:$0x3] }
 0x754   :  { %v1237_v25 = vadd.f32 %v1236_v5, %v1224_v6  ;;  %v2478_v5 = vld [vmem:[#allocation2] sm:$0x3] }
 0x756   :  { %v1240_v38 = vsel %vm242_vm0, %v1237_v25, -inf  ;;  %v1252_v53 = vmul.f32 %v1237_v25, %v2261_v26 }
 0x757   :  { %1241 = vmax.xlane.f32.xlu0 %v1240_v38 }
 0x758   :  { %v1253_v54 = vsel %vm242_vm0, %v1252_v53, 0.0 }
 0x759   :  { %v1225_v27 = vpop.f32.mrf.mxu2  ;;  %v1238_v29 = vpop.f32.mrf.mxu3 }
 0x7ca   :  { %v2456_v30 = vpop.xlane.xlu0 %1241 }
 0x7cb   :  { %v1243_v32 = vsub.f32 %v1237_v25, %v2456_v30 }
 0x7cd   :  { %v1244_v33 = vmul.f32 1.442695, %v1243_v32 }
 0x7cf   :  { %2005 = vpow2.f32 %v1244_v33 }
 0x7d0   :  { %2007 = vlog2.f32 %v2258_v23 }
 0x7d5   :  { %v2006_v34 = vpop.eup %2005 }
 0x7d6   :  { %v1246_v35 = vsel %vm242_vm0, %v2006_v34, 0.0  ;;  %v2008_v42 = vpop.eup %2007 }
 0x7d7   :  { %1247 = vadd.xlane.f32.xlu1 %v1246_v35  ;;  %v253_v58 = vmul.f32 0.6931472, %v2008_v42 }
 0x7d9   :  { %v254_v62 = vadd.f32 %v253_v58, %v2223_v3 }
 0x7df   :  { %257 = vadd.xlane.f32.xlu1 %v256_v37 }
 0x7e7   :  { %608 = vadd.xlane.f32.xlu1 %v607_v44 }
 0x7ef   :  { %931 = vadd.xlane.f32.xlu1 %v930_v51 }
 0x7f7   :  { %1254 = vadd.xlane.f32.xlu1 %v1253_v54 }
 0x84a   :  { %v1248_v41 = vpop.xlane.xlu1 %1247 }
 0x84b   :  { %2009 = vrcp.f32 %v1248_v41 }
 0x84c   :  { %2011 = vlog2.f32 %v2336_v55 }
 0x84d   :  { %2013 = vlog2.f32 %v2400_v59 }
 0x84e   :  { %2015 = vlog2.f32 %v1248_v41 }
 0x851   :  { %v2010_v4 = vpop.eup %2009 }
 0x852   :  { %v258_v6 = vpop.xlane.xlu1 %257  ;;  %v1276_v7 = vmul.f32 %v2010_v4, %v2006_v34  ;;  %v2012_v38 = vpop.eup %2011 }
 0x853   :  { %v2480_v25 = vsub.f32 %v254_v62, %v258_v6  ;;  %v604_v3 = vmul.f32 0.6931472, %v2012_v38  ;;  %v2014_v32 = vpop.eup %2013 }
 0x854   :  { %v1277_v27 = vsub.f32 %v1276_v7, %v2261_v26  ;;  %v927_v35 = vmul.f32 0.6931472, %v2014_v32  ;;  %v2016_v44 = vpop.eup %2015 }
 0x855   :  { %vm261_vm6 = vcmp.lt.f32.partialorder %v2478_v5, %v2480_v25  ;;  %v605_v29 = vadd.f32 %v604_v3, %v2331_v48 }
 0x856   :  { %v276_v23 = vsel %vm261_vm6, %v2480_v25, %v275_v24  ;;  %v1278_v55 = vpack.c.bf16 %v1277_v27, %v1277_v27  ;;  %v928_v37 = vadd.f32 %v927_v35, %v2395_v52  ;;  %v1250_v52 = vmul.f32 0.6931472, %v2016_v44 }
 0x857   :  { %277 = vst.msk [vmem:[#allocation2] sm:$0x3] %vm76_vm5, %v276_v23 }
 0x858   :  { %1965 = vmatmul.msk.bf16.vlgmr.msra.gmra.mxu0 %vm282_vm2, %v1278_v55  ;;  %1966 = vmatmul.msk.bf16.vlgmr.msra.gmra.mxu1 %vm282_vm2, %v1278_v55  ;;  %v1251_v60 = vadd.f32 %v1250_v52, %v2456_v30 }
 0x859   :  { %1967 = vmatmul.msk.bf16.vlgmr.msra.gmra.mxu2 %vm282_vm2, %v1278_v55  ;;  %1968 = vmatmul.msk.bf16.vlgmr.msra.gmra.mxu3 %vm282_vm2, %v1278_v55 }
 0x85a   :  { %v609_v26 = vpop.xlane.xlu1 %608  ;;  %1492 = vmatpush.bf16.xpose.msra.mxu2 %v2183_v16  ;;  %1466 = vmatpush.bf16.xpose.msra.mxu0 %v2179_v14 }
 0x85b   :  { %1505 = vmatpush.bf16.xpose.msra.mxu3 %v2185_v17  ;;  %1479 = vmatpush.bf16.xpose.msra.mxu1 %v2181_v15  ;;  %v2500_v59 = vsub.f32 %v605_v29, %v609_v26 }
 0x85e   :  { %v2502_v33 = vld [vmem:[#allocation2] sm:$0x3] }
 0x85f   :  { %v626_v34 = vld [vmem:[#allocation2] sm:$0x3]  ;;  %vm612_vm9 = vcmp.lt.f32.partialorder %v2502_v33, %v2500_v59 }
 0x860   :  { %v627_v48 = vsel %vm612_vm9, %v2500_v59, %v626_v34  ;;  %v262_v59 = vsel %vm261_vm6, 1, %v2136_v56 }
 0x861   :  { %628 = vst.msk [vmem:[#allocation2] sm:$0x3] %vm76_vm5, %v627_v48 }
 0x862   :  { %v932_v36 = vpop.xlane.xlu1 %931 }
 0x863   :  { %v2512_v39 = vsub.f32 %v928_v37, %v932_v36 }
 0x868   :  { %v2514_v45 = vld [vmem:[#allocation2] sm:$0x3]  ;;  %1969 = vmatmul.msk.bf16.vlgmr.msrb.gmra.mxu0 %vm282_vm2, %v1278_v55  ;;  %1970 = vmatmul.msk.bf16.vlgmr.msrb.gmra.mxu1 %vm282_vm2, %v1278_v55 }
 0x869   :  { %v949_v51 = vld [vmem:[#allocation2] sm:$0x3]  ;;  %vm935_vm10 = vcmp.lt.f32.partialorder %v2514_v45, %v2512_v39  ;;  %1971 = vmatmul.msk.bf16.vlgmr.msrb.gmra.mxu2 %vm282_vm2, %v1278_v55  ;;  %1972 = vmatmul.msk.bf16.vlgmr.msrb.gmra.mxu3 %vm282_vm2, %v1278_v55 }
 0x86a   :  { %v950_v53 = vsel %vm935_vm10, %v2512_v39, %v949_v51  ;;  %1544 = vmatpush.bf16.xpose.msrb.mxu2 %v2187_v18  ;;  %1518 = vmatpush.bf16.xpose.msrb.mxu0 %v2189_v19  ;;  %v1255_v54 = vpop.xlane.xlu1 %1254 }
 0x86b   :  { %951 = vst.msk [vmem:[#allocation2] sm:$0x3] %vm76_vm5, %v950_v53  ;;  %1557 = vmatpush.bf16.xpose.msrb.mxu3 %v2191_v20  ;;  %1531 = vmatpush.bf16.xpose.msrb.mxu1 %v2193_v21  ;;  %v2532_v42 = vsub.f32 %v1251_v60, %v1255_v54 }
 0x872   :  { %v2534_v41 = vld [vmem:[#allocation2] sm:$0x3] }
 0x873   :  { %v1272_v58 = vld [vmem:[#allocation2] sm:$0x3]  ;;  %vm1258_vm11 = vcmp.lt.f32.partialorder %v2534_v41, %v2532_v42 }
 0x874   :  { %v1273_v62 = vsel %vm1258_vm11, %v2532_v42, %v1272_v58 }
 0x875   :  { %1274 = vst.msk [vmem:[#allocation2] sm:$0x3] %vm76_vm5, %v1273_v62 }
 0x8d5   :  { %v1291_v4 = vpop.f32.mrf.mxu0  ;;  %v1304_v6 = vpop.f32.mrf.mxu1 }
 0x8d6   :  { %vm1387_vm12 = vcmp.ge.f32.partialorder %v1304_v6, 0.0  ;;  %vm1386_vm13 = vcmp.ge.f32.partialorder %v1291_v4, 0.0 }
 0x8d7   :  { %v1395_v30 = vsel %vm1387_vm12, 0.007843138, %v2134_v31  ;;  %v1394_v32 = vsel %vm1386_vm13, 0.007843138, %v2134_v31 }
 0x8d8   :  { %v1410_v38 = vrot.slane %v1395_v30, 6 }
 0x8da   :  { %v1416_v34 = vsel %vm445_vm7, %v1394_v32, %v1410_v38 }
 0x8dc   :  { %v1317_v7 = vpop.f32.mrf.mxu2  ;;  %v1330_v24 = vpop.f32.mrf.mxu3 }
 0x8dd   :  { %vm1388_vm14 = vcmp.ge.f32.partialorder %v1317_v7, 0.0  ;;  %vm1389_vm15 = vcmp.ge.f32.partialorder %v1330_v24, 0.0  ;;  %v1293_v27 = vpop.f32.mrf.mxu0  ;;  %v1306_v23 = vpop.f32.mrf.mxu1 }
 0x8de   :  { %v1396_v3 = vsel %vm1388_vm14, 0.007843138, %v2134_v31  ;;  %v1397_v55 = vsel %vm1389_vm15, 0.007843138, %v2134_v31 }
 0x8df   :  { %v1411_v26 = vrot.slane %v1396_v3, 4  ;;  %v1412_v29 = vrot.slane %v1397_v55, 2 }
 0x8e1   :  { %v1417_v48 = vsel %vm447_vm8, %v1411_v26, %v1412_v29 }
 0x8e2   :  { %v1418_v35 = vsel %vm286_vm1, %v1416_v34, %v1417_v48 }
 0x8e3   :  { %v1424_v36 = vadd.f32 %v1418_v35, %v2430_v61 }
 0x8e4   :  { %v1319_v37 = vpop.f32.mrf.mxu2  ;;  %v1332_v44 = vpop.f32.mrf.mxu3 }
 0x8e5   :  { %v1426_v51 = vmax.f32 %v1424_v36, %v2287_v47  ;;  %v1343_v53 = vpop.f32.mrf.mxu0  ;;  %v1356_v52 = vpop.f32.mrf.mxu1 }
 0x8e6   :  { %vm1391_vm3 = vcmp.ge.f32.partialorder %v1356_v52, 0.0  ;;  %vm1390_vm4 = vcmp.ge.f32.partialorder %v1343_v53, 0.0 }
 0x8e7   :  { %v2553_v54 = vmin.f32 %v1426_v51, %v2291_v50  ;;  %v1399_v60 = vsel %vm1391_vm3, 0.007843138, %v2134_v31  ;;  %v1398_v38 = vsel %vm1390_vm4, 0.007843138, %v2134_v31 }
 0x8e8   :  { %v1413_v4 = vrot.slane %v1399_v60, 6 }
 0x8e9   :  { %1432 = vst [vmem:[#allocation1] ss:$4 sm:$0xff] %v2553_v54 }
 0x8ea   :  { %v1419_v26 = vsel %vm445_vm7, %v1398_v38, %v1413_v4 }
 0x8ec   :  { %v1369_v58 = vpop.f32.mrf.mxu2  ;;  %v1382_v62 = vpop.f32.mrf.mxu3 }
 0x8ed   :  { %vm1392_vm12 = vcmp.ge.f32.partialorder %v1369_v58, 0.0  ;;  %vm1393_vm13 = vcmp.ge.f32.partialorder %v1382_v62, 0.0  ;;  %v1345_v6 = vpop.f32.mrf.mxu0  ;;  %v1358_v30 = vpop.f32.mrf.mxu1 }
 0x8ee   :  { %v1400_v7 = vsel %vm1392_vm12, 0.007843138, %v2134_v31  ;;  %v1401_v24 = vsel %vm1393_vm13, 0.007843138, %v2134_v31 }
 0x8ef   :  { %v1414_v27 = vrot.slane %v1400_v7, 4  ;;  %v1415_v23 = vrot.slane %v1401_v24, 2 }
 0x8f0   :  { %v1435_v3 = vld.sshfl [vmem:[#allocation1] sm:$0xff pattern:$0x73625140]  ;;  %v1436_v55 = vld.sshfl [vmem:[#allocation1 + $0x8] sm:$0xff pattern:$0x73625140] }
 0x8f1   :  { %v1420_v29 = vsel %vm447_vm8, %v1414_v27, %v1415_v23  ;;  %v1451_v32 = vpack.c.bf16 %v1435_v3, %v1435_v3  ;;  %v1452_v34 = vpack.c.bf16 %v1436_v55, %v1436_v55  ;;  %v1437_v48 = vld.sshfl [vmem:[#allocation1 + $0x10] sm:$0xff pattern:$0x73625140]  ;;  %v1438_v35 = vld.sshfl [vmem:[#allocation1 + $0x18] sm:$0xff pattern:$0x73625140] }
 0x8f2   :  { %v1421_v36 = vsel %vm286_vm1, %v1419_v26, %v1420_v29  ;;  %v1453_v37 = vpack.c.bf16 %v1437_v48, %v1437_v48  ;;  %v1454_v44 = vpack.c.bf16 %v1438_v35, %v1438_v35 }
 0x8f3   :  { %v1425_v51 = vadd.f32 %v1421_v36, %v2447_v63  ;;  %1467 = vmatmul.bf16.vlgmr.msra.gmra.mxu0 %v1451_v32  ;;  %1480 = vmatmul.bf16.vlgmr.msra.gmra.mxu1 %v1452_v34 }
 0x8f4   :  { %1493 = vmatmul.bf16.vlgmr.msra.gmra.mxu2 %v1453_v37  ;;  %1506 = vmatmul.bf16.vlgmr.msra.gmra.mxu3 %v1454_v44  ;;  %v1371_v53 = vpop.f32.mrf.mxu2  ;;  %v1384_v52 = vpop.f32.mrf.mxu3 }
 0x8f5   :  { %v1427_v60 = vmax.f32 %v1425_v51, %v2305_v28  ;;  %1638 = vmatpush.bf16.msra.mxu2 %v2215_v0  ;;  %1651 = vmatpush.bf16.msra.mxu3 %v2219_v1 }
 0x8f6   :  { %1625 = vmatpush.bf16.msra.mxu1 %v2230_v8  ;;  %1612 = vmatpush.bf16.msra.mxu0 %v2234_v10  ;;  %v2580_v8 = vld [vmem:[%s2696_s3] ss:$0 sm:$0xff]  ;;  %s2138_s3 = smov [#allocation9]  }
 0x8f7   :  { %v2570_v58 = vmin.f32 %v1427_v60, %v2310_v43  ;;  %s1926_s5 = sshll.u32 %s2138_s3, 4  ;;  %s1927_s5 = int_to_ptr.vmem [resolvable:$true] %s1926_s5 }
 0x8f9   :  { %1434 = vst [vmem:[#allocation1 + $0x20] ss:$4 sm:$0xff] %v2570_v58 }
 0x900   :  { %v1439_v62 = vld.sshfl [vmem:[#allocation1 + $0x20] sm:$0xff pattern:$0x73625140]  ;;  %v1440_v4 = vld.sshfl [vmem:[#allocation1 + $0x28] sm:$0xff pattern:$0x73625140] }
 0x901   :  { %v1455_v6 = vpack.c.bf16 %v1439_v62, %v1439_v62  ;;  %v1456_v30 = vpack.c.bf16 %v1440_v4, %v1440_v4  ;;  %v1441_v7 = vld.sshfl [vmem:[#allocation1 + $0x30] sm:$0xff pattern:$0x73625140]  ;;  %v1442_v24 = vld.sshfl [vmem:[#allocation1 + $0x38] sm:$0xff pattern:$0x73625140] }
 0x902   :  { %v1457_v38 = vpack.c.bf16 %v1441_v7, %v1441_v7  ;;  %v1458_v27 = vpack.c.bf16 %v1442_v24, %v1442_v24  ;;  %v2584_v62 = vld [vmem:[#allocation6] sm:$0x3]  ;;  %v936_v24 = vsel %vm935_vm10, 1, %v2136_v56 }
 0x903   :  { %1519 = vmatmul.bf16.vlgmr.msrb.gmra.mxu0 %v1455_v6  ;;  %1532 = vmatmul.bf16.vlgmr.msrb.gmra.mxu1 %v1456_v30 }
 0x904   :  { %1545 = vmatmul.bf16.vlgmr.msrb.gmra.mxu2 %v1457_v38  ;;  %1558 = vmatmul.bf16.vlgmr.msrb.gmra.mxu3 %v1458_v27  ;;  %v1259_v38 = vsel %vm1258_vm11, 1, %v2136_v56 }
 0x905   :  { %1690 = vmatpush.bf16.msrb.mxu2 %v2240_v11  ;;  %1703 = vmatpush.bf16.msrb.mxu3 %v2244_v12 }
 0x906   :  { %1677 = vmatpush.bf16.msrb.mxu1 %v2248_v13  ;;  %1664 = vmatpush.bf16.msrb.mxu0 %v2252_v22 }
 0x970   :  { %v1468_v0 = vpop.f32.mrf.mxu0  ;;  %v1481_v1 = vpop.f32.mrf.mxu1 }
 0x971   :  { %v1469_v10 = vadd.f32 %v2580_v8, %v1468_v0 }
 0x973   :  { %v1482_v11 = vadd.f32 %v1481_v1, %v1469_v10 }
 0x977   :  { %v1494_v23 = vpop.f32.mrf.mxu2  ;;  %v1507_v3 = vpop.f32.mrf.mxu3 }
 0x978   :  { %v1470_v55 = vpop.f32.mrf.mxu0  ;;  %v1483_v26 = vpop.f32.mrf.mxu1  ;;  %v1495_v29 = vadd.f32 %v1494_v23, %v1482_v11 }
 0x97a   :  { %v1508_v13 = vadd.f32 %v1507_v3, %v1495_v29 }
 0x97f   :  { %v1496_v12 = vpop.f32.mrf.mxu2  ;;  %v1509_v32 = vpop.f32.mrf.mxu3 }
 0x980   :  { %v1520_v34 = vpop.f32.mrf.mxu0  ;;  %v1533_v22 = vpop.f32.mrf.mxu1  ;;  %v2600_v32 = vld [vmem:[#allocation2] sm:$0x3] }
 0x981   :  { %v1521_v48 = vadd.f32 %v1520_v34, %v1508_v13  ;;  %v1595_v13 = vld [vmem:[#allocation2] sm:$0x3] }
 0x983   :  { %v1534_v35 = vadd.f32 %v1533_v22, %v1521_v48 }
 0x987   :  { %v1546_v36 = vpop.f32.mrf.mxu2  ;;  %v1559_v37 = vpop.f32.mrf.mxu3 }
 0x988   :  { %v1547_v44 = vadd.f32 %v1546_v36, %v1534_v35  ;;  %v1522_v51 = vpop.f32.mrf.mxu0  ;;  %v1535_v53 = vpop.f32.mrf.mxu1 }
 0x98a   :  { %v1560_v52 = vadd.f32 %v1559_v37, %v1547_v44 }
 0x98c   :  { %v1563_v60 = vsel %vm242_vm0, %v1560_v52, -inf  ;;  %v1575_v4 = vmul.f32 %v2584_v62, %v1560_v52 }
 0x98d   :  { %1564 = vmax.xlane.f32.xlu2 %v1563_v60 }
 0x98e   :  { %v1576_v6 = vsel %vm242_vm0, %v1575_v4, 0.0 }
 0x98f   :  { %v1548_v30 = vpop.f32.mrf.mxu2  ;;  %v1561_v7 = vpop.f32.mrf.mxu3  ;;  %1577 = vadd.xlane.f32.xlu1 %v1576_v6 }
 0x9a8   :  { %938 = vperm.xlu1 %1991, %v936_v24  }
 0x9b0   :  { %1261 = vperm.xlu1 %1991, %v1259_v38  }
 0xa00   :  { %v1565_v27 = vpop.xlane.xlu2 %1564 }
 0xa01   :  { %v1566_v0 = vsub.f32 %v1560_v52, %v1565_v27 }
 0xa02   :  { %v1578_v29 = vpop.xlane.xlu1 %1577 }
 0xa03   :  { %v1567_v1 = vmul.f32 1.442695, %v1566_v0 }
 0xa05   :  { %2017 = vpow2.f32 %v1567_v1 }
 0xa0b   :  { %v2018_v10 = vpop.eup %2017 }
 0xa0c   :  { %v1569_v23 = vsel %vm242_vm0, %v2018_v10, 0.0 }
 0xa0d   :  { %1570 = vadd.xlane.f32.xlu0 %v1569_v23 }
 0xa80   :  { %v1571_v3 = vpop.xlane.xlu0 %1570 }
 0xa81   :  { %2019 = vlog2.f32 %v1571_v3 }
 0xa82   :  { %2021 = vrcp.f32 %v1571_v3 }
 0xa87   :  { %v2020_v39 = vpop.eup %2019 }
 0xa88   :  { %v2022_v45 = vpop.eup %2021  ;;  %v1573_v55 = vmul.f32 0.6931472, %v2020_v39 }
 0xa89   :  { %v1599_v26 = vmul.f32 %v2022_v45, %v2018_v10 }
 0xa8a   :  { %v1574_v11 = vadd.f32 %v1573_v55, %v1565_v27 }
 0xa8b   :  { %v1600_v42 = vsub.f32 %v1599_v26, %v2584_v62 }
 0xa8c   :  { %v2598_v41 = vsub.f32 %v1574_v11, %v1578_v29 }
 0xa8d   :  { %v1601_v12 = vpack.c.bf16 %v1600_v42, %v1600_v42 }
 0xa8e   :  { %vm1581_vm10 = vcmp.lt.f32.partialorder %v2600_v32, %v2598_v41 }
 0xa8f   :  { %1973 = vmatmul.msk.bf16.vlgmr.msra.gmra.mxu0 %vm282_vm2, %v1601_v12  ;;  %1974 = vmatmul.msk.bf16.vlgmr.msra.gmra.mxu1 %vm282_vm2, %v1601_v12  ;;  %v1596_v34 = vsel %vm1581_vm10, %v2598_v41, %v1595_v13  ;;  %v1582_v33 = vsel %vm1581_vm10, 1, %v2136_v56 }
 0xa90   :  { %1975 = vmatmul.msk.bf16.vlgmr.msra.gmra.mxu2 %vm282_vm2, %v1601_v12  ;;  %1976 = vmatmul.msk.bf16.vlgmr.msra.gmra.mxu3 %vm282_vm2, %v1601_v12  ;;  %1597 = vst.msk [vmem:[#allocation2] sm:$0x3] %vm76_vm5, %v1596_v34 }
 0xa91   :  { %1815 = vmatpush.bf16.xpose.msra.mxu2 %v2183_v16  ;;  %1789 = vmatpush.bf16.xpose.msra.mxu0 %v2179_v14 }
 0xa92   :  { %1828 = vmatpush.bf16.xpose.msra.mxu3 %v2185_v17  ;;  %1802 = vmatpush.bf16.xpose.msra.mxu1 %v2181_v15 }
 0xa9f   :  { %1977 = vmatmul.msk.bf16.vlgmr.msrb.gmra.mxu0 %vm282_vm2, %v1601_v12  ;;  %1978 = vmatmul.msk.bf16.vlgmr.msrb.gmra.mxu1 %vm282_vm2, %v1601_v12 }
 0xaa0   :  { %1979 = vmatmul.msk.bf16.vlgmr.msrb.gmra.mxu2 %vm282_vm2, %v1601_v12  ;;  %1980 = vmatmul.msk.bf16.vlgmr.msrb.gmra.mxu3 %vm282_vm2, %v1601_v12 }
 0xaa1   :  { %1867 = vmatpush.bf16.xpose.msrb.mxu2 %v2187_v18  ;;  %1841 = vmatpush.bf16.xpose.msrb.mxu0 %v2189_v19 }
 0xaa2   :  { %1880 = vmatpush.bf16.xpose.msrb.mxu3 %v2191_v20  ;;  %1854 = vmatpush.bf16.xpose.msrb.mxu1 %v2193_v21 }
 0xb0c   :  { %v1614_v14 = vpop.f32.mrf.mxu0  ;;  %v1627_v16 = vpop.f32.mrf.mxu1 }
 0xb0d   :  { %vm1710_vm11 = vcmp.ge.f32.partialorder %v1627_v16, 0.0  ;;  %vm1709_vm14 = vcmp.ge.f32.partialorder %v1614_v14, 0.0 }
 0xb0e   :  { %v1718_v15 = vsel %vm1710_vm11, 0.007843138, %v2134_v31  ;;  %v1717_v21 = vsel %vm1709_vm14, 0.007843138, %v2134_v31 }
 0xb0f   :  { %v1733_v48 = vrot.slane %v1718_v15, 6 }
 0xb11   :  { %v1739_v44 = vsel %vm445_vm7, %v1717_v21, %v1733_v48 }
 0xb13   :  { %v1640_v17 = vpop.f32.mrf.mxu2  ;;  %v1653_v22 = vpop.f32.mrf.mxu3 }
 0xb14   :  { %vm1711_vm15 = vcmp.ge.f32.partialorder %v1640_v17, 0.0  ;;  %vm1712_vm3 = vcmp.ge.f32.partialorder %v1653_v22, 0.0  ;;  %v1616_v35 = vpop.f32.mrf.mxu0  ;;  %v1629_v36 = vpop.f32.mrf.mxu1 }
 0xb15   :  { %v1719_v18 = vsel %vm1711_vm15, 0.007843138, %v2134_v31  ;;  %v1720_v19 = vsel %vm1712_vm3, 0.007843138, %v2134_v31 }
 0xb16   :  { %v1734_v20 = vrot.slane %v1719_v18, 4  ;;  %v1735_v37 = vrot.slane %v1720_v19, 2 }
 0xb18   :  { %v1740_v51 = vsel %vm447_vm8, %v1734_v20, %v1735_v37 }
 0xb19   :  { %v1741_v53 = vsel %vm286_vm1, %v1739_v44, %v1740_v51 }
 0xb1a   :  { %v1747_v52 = vadd.f32 %v1741_v53, %v2553_v54 }
 0xb1b   :  { %v1642_v60 = vpop.f32.mrf.mxu2  ;;  %v1655_v4 = vpop.f32.mrf.mxu3 }
 0xb1c   :  { %v1749_v6 = vmax.f32 %v1747_v52, %v2287_v47  ;;  %v1666_v30 = vpop.f32.mrf.mxu0  ;;  %v1679_v7 = vpop.f32.mrf.mxu1 }
 0xb1d   :  { %vm1714_vm2 = vcmp.ge.f32.partialorder %v1679_v7, 0.0  ;;  %vm1713_vm4 = vcmp.ge.f32.partialorder %v1666_v30, 0.0 }
 0xb1e   :  { %v2635_v24 = vmin.f32 %v1749_v6, %v2291_v50  ;;  %v1722_v38 = vsel %vm1714_vm2, 0.007843138, %v2134_v31  ;;  %v1721_v50 = vsel %vm1713_vm4, 0.007843138, %v2134_v31 }
 0xb1f   :  { %v1736_v1 = vrot.slane %v1722_v38, 6 }
 0xb20   :  { %1755 = vst [vmem:[#allocation1] ss:$4 sm:$0xff] %v2635_v24 }
 0xb21   :  { %v1742_v11 = vsel %vm445_vm7, %v1721_v50, %v1736_v1 }
 0xb23   :  { %v1692_v27 = vpop.f32.mrf.mxu2  ;;  %v1705_v0 = vpop.f32.mrf.mxu3 }
 0xb24   :  { %vm1715_vm12 = vcmp.ge.f32.partialorder %v1692_v27, 0.0  ;;  %vm1716_vm13 = vcmp.ge.f32.partialorder %v1705_v0, 0.0  ;;  %v1668_v10 = vpop.f32.mrf.mxu0  ;;  %v1681_v23 = vpop.f32.mrf.mxu1 }
 0xb25   :  { %v1723_v47 = vsel %vm1715_vm12, 0.007843138, %v2134_v31  ;;  %v1724_v3 = vsel %vm1716_vm13, 0.007843138, %v2134_v31 }
 0xb26   :  { %v1737_v39 = vrot.slane %v1723_v47, 4  ;;  %v1738_v45 = vrot.slane %v1724_v3, 2 }
 0xb27   :  { %v1758_v55 = vld.sshfl [vmem:[#allocation1] sm:$0xff pattern:$0x73625140]  ;;  %v1759_v26 = vld.sshfl [vmem:[#allocation1 + $0x8] sm:$0xff pattern:$0x73625140] }
 0xb28   :  { %v1743_v29 = vsel %vm447_vm8, %v1737_v39, %v1738_v45  ;;  %v1774_v42 = vpack.c.bf16 %v1758_v55, %v1758_v55  ;;  %v1775_v12 = vpack.c.bf16 %v1759_v26, %v1759_v26  ;;  %v1760_v13 = vld.sshfl [vmem:[#allocation1 + $0x10] sm:$0xff pattern:$0x73625140]  ;;  %v1761_v34 = vld.sshfl [vmem:[#allocation1 + $0x18] sm:$0xff pattern:$0x73625140] }
 0xb29   :  { %v1744_v14 = vsel %vm286_vm1, %v1742_v11, %v1743_v29  ;;  %v1776_v16 = vpack.c.bf16 %v1760_v13, %v1760_v13  ;;  %v1777_v15 = vpack.c.bf16 %v1761_v34, %v1761_v34 }
 0xb2a   :  { %v1748_v17 = vadd.f32 %v1744_v14, %v2570_v58  ;;  %1790 = vmatmul.bf16.vlgmr.msra.gmra.mxu0 %v1774_v42  ;;  %1803 = vmatmul.bf16.vlgmr.msra.gmra.mxu1 %v1775_v12  ;;  %v613_v42 = vsel %vm612_vm9, 1, %v2136_v56 }
 0xb2b   :  { %1816 = vmatmul.bf16.vlgmr.msra.gmra.mxu2 %v1776_v16  ;;  %1829 = vmatmul.bf16.vlgmr.msra.gmra.mxu3 %v1777_v15  ;;  %v1694_v31 = vpop.f32.mrf.mxu2  ;;  %v1707_v22 = vpop.f32.mrf.mxu3 }
 0xb2c   :  { %v1750_v48 = vmax.f32 %v1748_v17, %v2305_v28 }
 0xb2e   :  { %v2648_v35 = vmin.f32 %v1750_v48, %v2310_v43  ;;  %v2137_v48 = vmov 269488144  }
 0xb30   :  { %1757 = vst [vmem:[#allocation1 + $0x20] ss:$4 sm:$0xff] %v2648_v35 }
 0xb37   :  { %v1762_v36 = vld.sshfl [vmem:[#allocation1 + $0x20] sm:$0xff pattern:$0x73625140]  ;;  %v1763_v18 = vld.sshfl [vmem:[#allocation1 + $0x28] sm:$0xff pattern:$0x73625140] }
 0xb38   :  { %v1778_v19 = vpack.c.bf16 %v1762_v36, %v1762_v36  ;;  %v1779_v20 = vpack.c.bf16 %v1763_v18, %v1763_v18  ;;  %v1764_v37 = vld.sshfl [vmem:[#allocation1 + $0x30] sm:$0xff pattern:$0x73625140]  ;;  %v1765_v21 = vld.sshfl [vmem:[#allocation1 + $0x38] sm:$0xff pattern:$0x73625140]  ;;  %v269_v36 = vunpack.c.l.s4 %v2137_v48 }
 0xb39   :  { %v1780_v44 = vpack.c.bf16 %v1764_v37, %v1764_v37  ;;  %v1781_v51 = vpack.c.bf16 %v1765_v21, %v1765_v21 }
 0xb3a   :  { %1842 = vmatmul.bf16.vlgmr.msrb.gmra.mxu0 %v1778_v19  ;;  %1855 = vmatmul.bf16.vlgmr.msrb.gmra.mxu1 %v1779_v20  ;;  %v270_v37 = vunpack.c.0.s8 %v269_v36 }
 0xb3b   :  { %1868 = vmatmul.bf16.vlgmr.msrb.gmra.mxu2 %v1780_v44  ;;  %1881 = vmatmul.bf16.vlgmr.msrb.gmra.mxu3 %v1781_v51 }
 0xba7   :  { %v1791_v53 = vpop.f32.mrf.mxu0  ;;  %v1804_v52 = vpop.f32.mrf.mxu1 }
 0xba8   :  { %v1792_v28 = vadd.f32 %v2580_v8, %v1791_v53 }
 0xbaa   :  { %v1805_v30 = vadd.f32 %v1804_v52, %v1792_v28 }
 0xbae   :  { %v1817_v43 = vpop.f32.mrf.mxu2  ;;  %v1830_v60 = vpop.f32.mrf.mxu3 }
 0xbaf   :  { %v1793_v4 = vpop.f32.mrf.mxu0  ;;  %v1806_v6 = vpop.f32.mrf.mxu1  ;;  %v1818_v7 = vadd.f32 %v1817_v43, %v1805_v30 }
 0xbb1   :  { %v1831_v0 = vadd.f32 %v1830_v60, %v1818_v7  ;;  %v1903_v60 = vld [vmem:[#allocation2] sm:$0x3] }
 0xbb6   :  { %v1819_v38 = vpop.f32.mrf.mxu2  ;;  %v1832_v27 = vpop.f32.mrf.mxu3 }
 0xbb7   :  { %v1843_v1 = vpop.f32.mrf.mxu0  ;;  %v1856_v10 = vpop.f32.mrf.mxu1 }
 0xbb8   :  { %v1844_v23 = vadd.f32 %v1843_v1, %v1831_v0 }
 0xbba   :  { %v1857_v47 = vadd.f32 %v1856_v10, %v1844_v23 }
 0xbbe   :  { %v1869_v3 = vpop.f32.mrf.mxu2  ;;  %v1882_v50 = vpop.f32.mrf.mxu3 }
 0xbbf   :  { %v1870_v39 = vadd.f32 %v1869_v3, %v1857_v47  ;;  %v1845_v45 = vpop.f32.mrf.mxu0  ;;  %v1858_v55 = vpop.f32.mrf.mxu1 }
 0xbc1   :  { %v1883_v26 = vadd.f32 %v1882_v50, %v1870_v39 }
 0xbc3   :  { %v1886_v8 = vsel %vm242_vm0, %v1883_v26, -inf  ;;  %v1898_v12 = vmul.f32 %v2584_v62, %v1883_v26  ;;  %v939_v62 = vpop.permute.xlu1 %938 }
 0xbc4   :  { %1887 = vmax.xlane.f32.xlu0 %v1886_v8  ;;  %vm940_vm1 = vcmp.eq.s32.totalorder %v939_v62, 1 }
 0xbc5   :  { %v1899_v13 = vsel %vm242_vm0, %v1898_v12, 0.0  ;;  %v941_v41 = vsel %vm940_vm1, 1, %v2136_v56 }
 0xbc6   :  { %v1871_v11 = vpop.f32.mrf.mxu2  ;;  %v1884_v29 = vpop.f32.mrf.mxu3  ;;  %v945_v43 = vperm.slane %v941_v41, %v270_v37 }
 0xbc8   :  { %vm946_vm11 = vcmp.ne.s32.totalorder %v945_v43, 0 }
 0xbcb   :  { %v1262_v18 = vpop.permute.xlu1 %1261 }
 0xbcc   :  { %vm1263_vm7 = vcmp.eq.s32.totalorder %v1262_v18, 1 }
 0xbcd   :  { %v1264_v52 = vsel %vm1263_vm7, 1, %v2136_v56 }
 0xbce   :  { %v1268_v4 = vperm.slane %v1264_v52, %v270_v37 }
 0xbd0   :  { %vm1269_vm15 = vcmp.ne.s32.totalorder %v1268_v4, 0 }
 0xbd8   :  { %615 = vperm.xlu0 %1989, %v613_v42  }
 0xc02   :  { %1900 = vadd.xlane.f32.xlu0 %v1899_v13 }
 0xc37   :  { %v1888_v34 = vpop.xlane.xlu0 %1887 }
 0xc38   :  { %v1889_v14 = vsub.f32 %v1883_v26, %v1888_v34 }
 0xc3a   :  { %v1890_v16 = vmul.f32 1.442695, %v1889_v14 }
 0xc3c   :  { %2023 = vpow2.f32 %v1890_v16 }
 0xc42   :  { %v2024_v15 = vpop.eup %2023 }
 0xc43   :  { %v1892_v17 = vsel %vm242_vm0, %v2024_v15, 0.0 }
 0xc44   :  { %1893 = vadd.xlane.f32.xlu2 %v1892_v17 }
 0xc4a   :  { %v616_v22 = vpop.permute.xlu0 %615 }
 0xc4b   :  { %vm617_vm0 = vcmp.eq.s32.totalorder %v616_v22, 1 }
 0xc4c   :  { %v618_v5 = vsel %vm617_vm0, 1, %v2136_v56 }
 0xc4d   :  { %v622_v44 = vperm.slane %v618_v5, %v270_v37 }
 0xc4f   :  { %vm623_vm10 = vcmp.ne.s32.totalorder %v622_v44, 0 }
 0xc5c   :  { %264 = vperm.xlu2 %1990, %v262_v59  }
 0xc64   :  { %1584 = vperm.xlu2 %1990, %v1582_v33  }
 0xc75   :  { %v1901_v51 = vpop.xlane.xlu0 %1900 }
 0xcb7   :  { %v1894_v31 = vpop.xlane.xlu2 %1893 }
 0xcb8   :  { %2025 = vlog2.f32 %v1894_v31 }
 0xcbe   :  { %v2026_v19 = vpop.eup %2025 }
 0xcbf   :  { %v1896_v25 = vmul.f32 0.6931472, %v2026_v19  ;;  %v265_v20 = vpop.permute.xlu2 %264 }
 0xcc0   :  { %vm266_vm8 = vcmp.eq.s32.totalorder %v265_v20, 1 }
 0xcc1   :  { %v1897_v32 = vadd.f32 %v1896_v25, %v1888_v34  ;;  %v267_v21 = vsel %vm266_vm8, 1, %v2136_v56 }
 0xcc2   :  { %v271_v53 = vperm.slane %v267_v21, %v270_v37 }
 0xcc3   :  { %v1902_v28 = vsub.f32 %v1897_v32, %v1901_v51 }
 0xcc4   :  { %vm272_vm6 = vcmp.ne.s32.totalorder %v271_v53, 0 }
 0xcc5   :  { %273 = vst.msk [vmem:[#allocation9] sm:$0xff] %vm272_vm6, %v2173_v2  ;;  %vm1904_vm9 = vcmp.lt.f32.partialorder %v1903_v60, %v1902_v28 }
 0xcc6   :  { %274 = vst.msk [vmem:[#allocation9 + $0x8] sm:$0xff] %vm272_vm6, %v2176_v9  ;;  %v1905_v6 = vsel %vm1904_vm9, 1, %v2136_v56  ;;  %v1918_v9 = vld [vmem:[#allocation2] sm:$0x3] }
 0xcc7   :  { %624 = vst.msk [vmem:[#allocation9] sm:$0xff] %vm623_vm10, %v2296_v57  ;;  %v1585_v30 = vpop.permute.xlu2 %1584  ;;  %1907 = vperm.xlu1 %1991, %v1905_v6   ;;  %v1919_v57 = vsel %vm1904_vm9, %v1902_v28, %v1918_v9 }
 0xcc8   :  { %625 = vst.msk [vmem:[#allocation9 + $0x8] sm:$0xff] %vm623_vm10, %v2319_v49  ;;  %vm1586_vm14 = vcmp.eq.s32.totalorder %v1585_v30, 1 }
 0xcc9   :  { %947 = vst.msk [vmem:[#allocation9] sm:$0xff] %vm946_vm11, %v2366_v46  ;;  %v1587_v2 = vsel %vm1586_vm14, 1, %v2136_v56 }
 0xcca   :  { %948 = vst.msk [vmem:[#allocation9 + $0x8] sm:$0xff] %vm946_vm11, %v2383_v40  ;;  %v1591_v7 = vperm.slane %v1587_v2, %v270_v37 }
 0xccb   :  { %1270 = vst.msk [vmem:[#allocation9] sm:$0xff] %vm1269_vm15, %v2430_v61 }
 0xccc   :  { %1271 = vst.msk [vmem:[#allocation9 + $0x8] sm:$0xff] %vm1269_vm15, %v2447_v63  ;;  %vm1592_vm3 = vcmp.ne.s32.totalorder %v1591_v7, 0 }
 0xccd   :  { %1593 = vst.msk [vmem:[#allocation9] sm:$0xff] %vm1592_vm3, %v2553_v54 }
 0xcce   :  { %1594 = vst.msk [vmem:[#allocation9 + $0x8] sm:$0xff] %vm1592_vm3, %v2570_v58 }
 0xccf   :  { %1920 = vst.msk [vmem:[#allocation2] sm:$0x3] %vm76_vm5, %v1919_v57 }
 0xd39   :  { %v1908_v49 = vpop.permute.xlu1 %1907 }
 0xd3a   :  { %vm1909_vm2 = vcmp.eq.s32.totalorder %v1908_v49, 1 }
 0xd3b   :  { %v1910_v46 = vsel %vm1909_vm2, 1, %v2136_v56 }
 0xd3c   :  { %v1914_v40 = vperm.slane %v1910_v46, %v270_v37 }
 0xd3e   :  { %vm1915_vm4 = vcmp.ne.s32.totalorder %v1914_v40, 0 }
 0xd3f   :  { %1916 = vst.msk [vmem:[#allocation9] sm:$0xff] %vm1915_vm4, %v2635_v24 }
 0xd40   :  { %1917 = vst.msk [vmem:[#allocation9 + $0x8] sm:$0xff] %vm1915_vm4, %v2648_v35 }
 0xd41   :  { %1931 = dma.vmem_to_hbm [thread:$0]  %s1927_s5, 256, %s1929_s8, [#allocation5]  }
 0xd42   :  { %2129 = dma.done.wait [#allocation5], 256  }
 0xd43   :  { %2130 = vsyncadd [#allocation5], 4294967040 }
 0xd44   :  { %1936 = vsyncpa [#allocation4], 1 }
 0xd45   :  { %1937 = vsyncpa [#allocation7], 1 }
 0xd46   :  { %1938 = vsyncpa [#allocation5], 1 }

</bundles_post_ra>
